<compile_context>
chip_gen: v5e
topology: v5e:2x2
jax: 0.10.0
libtpu: 0.0.40
codegen_flags: <defaults>
</compile_context>

<pallas_src>
import functools

import jax
import jax.numpy as jnp
import numpy as np
from jax.experimental import pallas as pl
from jax.experimental.pallas import tpu as pltpu


def _round_up(x, m):
    return ((x + m - 1) // m) * m


def _image_sample_kernel(qidx_ref, qw_ref, data_ref, out_ref, acc_ref, iota_ref,
                         *, tile_nhw):
    k = pl.program_id(1)
    nk = pl.num_programs(1)

    @pl.when(k == 0)
    def _():
        # Row-index iota depends only on local coordinates; refill at k == 0 so
        # it is valid on every core even when the "parallel" query axis is
        # split across TensorCores.  Also zero the accumulator.
        iota_ref[...] = jax.lax.broadcasted_iota(jnp.int32, iota_ref.shape, 0)
        acc_ref[...] = jnp.zeros_like(acc_ref)

    rows = iota_ref[...]                         # (tile_nhw, tile_p) int32
    data_t = data_ref[...]                       # (C, tile_nhw) f32, lane-dense
    k_off = k * tile_nhw

    acc = acc_ref[...]
    for c in range(4):                           # statically unrolled corners
        idx_local = qidx_ref[c:c + 1, :] - k_off              # (1, tile_p)
        onehot = (rows == idx_local).astype(jnp.float32)      # exact 0/1
        part = jnp.dot(data_t, onehot,
                       preferred_element_type=jnp.float32)    # (C, tile_p) MXU
        # Fractional weights applied only to the narrow result (VPU-cheap).
        acc = acc + qw_ref[c:c + 1, :] * part
    acc_ref[...] = acc

    @pl.when(k == nk - 1)
    def _():
        out_ref[...] = acc_ref[...].astype(out_ref.dtype)


def image_sample(data, iind, ys, xs, *, tile_p=256, tile_nhw=2048):
    """data: (N, H, W, C) float32; iind: (P,) int; ys, xs: (P,) float.
    Returns (P, C) float32 -- same semantics as Image.forward."""
    N, H, W, C = data.shape
    P = ys.shape[0]
    NHW = N * H * W

    # --- per-query preprocessing (cheap XLA) ---------------------------------
    y = ys.astype(jnp.float32)
    x = xs.astype(jnp.float32)
    iy = y.astype(jnp.int32)                 # torch .long(): trunc toward zero
    ix = x.astype(jnp.int32)
    wy = y - iy.astype(jnp.float32)          # lerp_weights[:, 0]
    wx = x - ix.astype(jnp.float32)          # lerp_weights[:, 1]

    y0 = jnp.clip(iy, 0, H - 1)
    x0 = jnp.clip(ix, 0, W - 1)
    y1 = jnp.minimum(y0 + 1, H - 1)
    x1 = jnp.minimum(x0 + 1, W - 1)
    n = jnp.clip(iind.astype(jnp.int32), 0, N - 1)   # clamp OOB image indices

    base = n * (H * W)
    idx00 = base + y0 * W + x0
    idx01 = base + y0 * W + x1
    idx10 = base + y1 * W + x0
    idx11 = base + y1 * W + x1

    # Corner weights exactly as written in the PyTorch module (wy pairs with
    # the x1 column, wx with the y1 row) -- intentional, do not "fix".
    w00 = (1.0 - wy) * (1.0 - wx)
    w01 = wy * (1.0 - wx)
    w10 = (1.0 - wy) * wx
    w11 = wy * wx

    qidx = jnp.stack([idx00, idx01, idx10, idx11], axis=0)             # (4, P) i32
    qw = jnp.stack([w00, w01, w10, w11], axis=0).astype(jnp.float32)   # (4, P) f32

    # --- lane-dense pixel table (in the real module `data` is fixed at init,
    #     so this transpose would be done once up front) ----------------------
    data_t = data.reshape(NHW, C).T.astype(jnp.float32)                # (C, NHW)

    # --- tile selection / padding --------------------------------------------
    tile_p = min(tile_p, _round_up(P, 128))
    tile_nhw = min(tile_nhw, _round_up(NHW, 128))
    P_pad = _round_up(P, tile_p)
    NHW_pad = _round_up(NHW, tile_nhw)
    if P_pad != P:
        qidx = jnp.pad(qidx, ((0, 0), (0, P_pad - P)))
        qw = jnp.pad(qw, ((0, 0), (0, P_pad - P)))
    if NHW_pad != NHW:
        data_t = jnp.pad(data_t, ((0, 0), (0, NHW_pad - NHW)))

    kernel = functools.partial(_image_sample_kernel, tile_nhw=tile_nhw)

    out_t = pl.pallas_call(
        kernel,
        out_shape=jax.ShapeDtypeStruct((C, P_pad), jnp.float32),
        grid_spec=pltpu.PrefetchScalarGridSpec(
            num_scalar_prefetch=0,
            grid=(P_pad // tile_p, NHW_pad // tile_nhw),
            in_specs=[
                pl.BlockSpec((4, tile_p), lambda i, k: (0, i)),       # corner indices
                pl.BlockSpec((4, tile_p), lambda i, k: (0, i)),       # corner weights
                pl.BlockSpec((C, tile_nhw), lambda i, k: (0, k)),     # pixel-table slab
            ],
            out_specs=pl.BlockSpec((C, tile_p), lambda i, k: (0, i)),
            scratch_shapes=[
                pltpu.VMEM((C, tile_p), jnp.float32),        # accumulator
                pltpu.VMEM((tile_nhw, tile_p), jnp.int32),   # cached row iota
            ],
        ),
        compiler_params=pltpu.CompilerParams(
            dimension_semantics=("parallel", "arbitrary"),
            vmem_limit_bytes=32 * 1024 * 1024,
        ),
    )(qidx, qw, data_t)

    return out_t[:, :P].T                                             # (P, C)


def _reference(data, iind, ys, xs):
    # Pure-JAX reference mirroring the PyTorch forward exactly.
    N, H, W, C = data.shape
    xy = jnp.stack([ys, xs], axis=1)
    idx = xy.astype(jnp.int32)
    lw = xy - idx.astype(jnp.float32)
    y0 = jnp.clip(idx[:, 0], 0, H - 1)
    x0 = jnp.clip(idx[:, 1], 0, W - 1)
    y1 = jnp.minimum(y0 + 1, H - 1)
    x1 = jnp.minimum(x0 + 1, W - 1)
    wy = lw[:, 0:1]
    wx = lw[:, 1:2]
    return (data[iind, y0, x0] * (1.0 - wy) * (1.0 - wx)
            + data[iind, y0, x1] * wy * (1.0 - wx)
            + data[iind, y1, x0] * (1.0 - wy) * wx
            + data[iind, y1, x1] * wy * wx)


if __name__ == "__main__":
    key = jax.random.PRNGKey(0)
    k_data, k_i, k_y, k_x = jax.random.split(key, 4)

    N, H, W, C = 2, 16, 16, 4       # small image stack (N, H, W, C)
    P = 512                         # number of query points

    data = jax.random.normal(k_data, (N, H, W, C), dtype=jnp.float32)
    iind = jax.random.randint(k_i, (P,), 0, N, dtype=jnp.int32)
    ys = jax.random.uniform(k_y, (P,), dtype=jnp.float32) * (H - 1)
    xs = jax.random.uniform(k_x, (P,), dtype=jnp.float32) * (W - 1)

    out = image_sample(data, iind, ys, xs)
    out = jax.block_until_ready(out)

    ref = _reference(data, iind, ys, xs)
    np.testing.assert_allclose(np.asarray(out), np.asarray(ref), rtol=1e-5, atol=1e-5)

    print("KERNEL_OK")
</pallas_src>

<mosaic_0001>
module attributes {stable_mosaic.version = 11 : i64} {
  func.func @_image_sample_kernel(%arg0: i32, %arg1: i32, %arg2: memref<4x256xi32, #tpu.memory_space<vmem>>, %arg3: memref<4x256xf32, #tpu.memory_space<vmem>>, %arg4: memref<4x512xf32, #tpu.memory_space<vmem>>, %arg5: memref<4x256xf32, #tpu.memory_space<vmem>>, %arg6: memref<4x256xf32, #tpu.memory_space<vmem>>, %arg7: memref<512x256xi32, #tpu.memory_space<vmem>>) attributes {dimension_semantics = [#tpu.dimension_semantics<parallel>, #tpu.dimension_semantics<arbitrary>], iteration_bounds = array<i64: 2, 1>, scalar_prefetch = 0 : i64, scratch_operands = 2 : i64, tpu.core_type = #tpu.core_type<tc>, window_params = [{transform_indices = @transform_0, window_bounds = array<i64: 4, 256>}, {transform_indices = @transform_1, window_bounds = array<i64: 4, 256>}, {transform_indices = @transform_2, window_bounds = array<i64: 4, 512>}, {transform_indices = @transform_3, window_bounds = array<i64: 4, 256>}]} {
    %c0_i32 = arith.constant 0 : i32
    %0 = arith.cmpi eq, %arg1, %c0_i32 : i32
    %1 = arith.extui %0 : i1 to i32
    %c0_i32_0 = arith.constant 0 : i32
    %2 = arith.cmpi ne, %1, %c0_i32_0 : i32
    scf.if %2 {
      %59 = tpu.iota {dimensions = array<i32: 0>} : vector<512x256xi32>
      %c0_26 = arith.constant 0 : index
      %c0_27 = arith.constant 0 : index
      %60 = vector.load %arg7[%c0_26, %c0_27] : memref<512x256xi32, #tpu.memory_space<vmem>>, vector<512x256xi32>
      tpu.vector_store %arg7[%c0_26, %c0_27], %59 {strides = array<i32>} : memref<512x256xi32, #tpu.memory_space<vmem>>, vector<512x256xi32>,
      %cst_28 = arith.constant 0.000000e+00 : f32
      %61 = vector.broadcast %cst_28 : f32 to vector<4x256xf32>
      %c0_29 = arith.constant 0 : index
      %c0_30 = arith.constant 0 : index
      %62 = vector.load %arg6[%c0_29, %c0_30] : memref<4x256xf32, #tpu.memory_space<vmem>>, vector<4x256xf32>
      tpu.vector_store %arg6[%c0_29, %c0_30], %61 {strides = array<i32>} : memref<4x256xf32, #tpu.memory_space<vmem>>, vector<4x256xf32>,
    } else {
    }
    %c0 = arith.constant 0 : index
    %c0_1 = arith.constant 0 : index
    %3 = vector.load %arg7[%c0, %c0_1] : memref<512x256xi32, #tpu.memory_space<vmem>>, vector<512x256xi32>
    %c0_2 = arith.constant 0 : index
    %c0_3 = arith.constant 0 : index
    %4 = vector.load %arg4[%c0_2, %c0_3] : memref<4x512xf32, #tpu.memory_space<vmem>>, vector<4x512xf32>
    %c512_i32 = arith.constant 512 : i32
    %5 = arith.muli %arg1, %c512_i32 : i32
    %c0_4 = arith.constant 0 : index
    %c0_5 = arith.constant 0 : index
    %6 = vector.load %arg6[%c0_4, %c0_5] : memref<4x256xf32, #tpu.memory_space<vmem>>, vector<4x256xf32>
    %c0_6 = arith.constant 0 : index
    %c0_7 = arith.constant 0 : index
    %7 = vector.load %arg2[%c0_6, %c0_7] : memref<4x256xi32, #tpu.memory_space<vmem>>, vector<1x256xi32>
    %8 = vector.broadcast %5 : i32 to vector<1x256xi32>
    %9 = arith.subi %7, %8 : vector<1x256xi32>
    %10 = vector.broadcast %9 : vector<1x256xi32> to vector<512x256xi32>
    %11 = arith.cmpi eq, %3, %10 : vector<512x256xi32>
    %12 = arith.extui %11 : vector<512x256xi1> to vector<512x256xi32>
    %13 = arith.sitofp %12 : vector<512x256xi32> to vector<512x256xf32>
    %cst = arith.constant dense<0.000000e+00> : vector<4x256xf32>
    %14 = tpu.matmul %4, %13, %cst {dimension_numbers = #tpu.dot_dimension_numbers<[1], [0], [0], [1], [0, 0, 1, 1], [], []>} : vector<4x512xf32>, vector<512x256xf32>, vector<4x256xf32> -> vector<4x256xf32>
    %c0_8 = arith.constant 0 : index
    %c0_9 = arith.constant 0 : index
    %15 = vector.load %arg3[%c0_8, %c0_9] : memref<4x256xf32, #tpu.memory_space<vmem>>, vector<1x256xf32>
    %16 = vector.broadcast %15 : vector<1x256xf32> to vector<4x256xf32>
    %17 = arith.mulf %16, %14 : vector<4x256xf32>
    %18 = arith.addf %6, %17 : vector<4x256xf32>
    %c1 = arith.constant 1 : index
    %c0_10 = arith.constant 0 : index
    %19 = vector.load %arg2[%c1, %c0_10] : memref<4x256xi32, #tpu.memory_space<vmem>>, vector<1x256xi32>
    %20 = vector.broadcast %5 : i32 to vector<1x256xi32>
    %21 = arith.subi %19, %20 : vector<1x256xi32>
    %22 = vector.broadcast %21 : vector<1x256xi32> to vector<512x256xi32>
    %23 = arith.cmpi eq, %3, %22 : vector<512x256xi32>
    %24 = arith.extui %23 : vector<512x256xi1> to vector<512x256xi32>
    %25 = arith.sitofp %24 : vector<512x256xi32> to vector<512x256xf32>
    %cst_11 = arith.constant dense<0.000000e+00> : vector<4x256xf32>
    %26 = tpu.matmul %4, %25, %cst_11 {dimension_numbers = #tpu.dot_dimension_numbers<[1], [0], [0], [1], [0, 0, 1, 1], [], []>} : vector<4x512xf32>, vector<512x256xf32>, vector<4x256xf32> -> vector<4x256xf32>
    %c1_12 = arith.constant 1 : index
    %c0_13 = arith.constant 0 : index
    %27 = vector.load %arg3[%c1_12, %c0_13] : memref<4x256xf32, #tpu.memory_space<vmem>>, vector<1x256xf32>
    %28 = vector.broadcast %27 : vector<1x256xf32> to vector<4x256xf32>
    %29 = arith.mulf %28, %26 : vector<4x256xf32>
    %30 = arith.addf %18, %29 : vector<4x256xf32>
    %c2 = arith.constant 2 : index
    %c0_14 = arith.constant 0 : index
    %31 = vector.load %arg2[%c2, %c0_14] : memref<4x256xi32, #tpu.memory_space<vmem>>, vector<1x256xi32>
    %32 = vector.broadcast %5 : i32 to vector<1x256xi32>
    %33 = arith.subi %31, %32 : vector<1x256xi32>
    %34 = vector.broadcast %33 : vector<1x256xi32> to vector<512x256xi32>
    %35 = arith.cmpi eq, %3, %34 : vector<512x256xi32>
    %36 = arith.extui %35 : vector<512x256xi1> to vector<512x256xi32>
    %37 = arith.sitofp %36 : vector<512x256xi32> to vector<512x256xf32>
    %cst_15 = arith.constant dense<0.000000e+00> : vector<4x256xf32>
    %38 = tpu.matmul %4, %37, %cst_15 {dimension_numbers = #tpu.dot_dimension_numbers<[1], [0], [0], [1], [0, 0, 1, 1], [], []>} : vector<4x512xf32>, vector<512x256xf32>, vector<4x256xf32> -> vector<4x256xf32>
    %c2_16 = arith.constant 2 : index
    %c0_17 = arith.constant 0 : index
    %39 = vector.load %arg3[%c2_16, %c0_17] : memref<4x256xf32, #tpu.memory_space<vmem>>, vector<1x256xf32>
    %40 = vector.broadcast %39 : vector<1x256xf32> to vector<4x256xf32>
    %41 = arith.mulf %40, %38 : vector<4x256xf32>
    %42 = arith.addf %30, %41 : vector<4x256xf32>
    %c3 = arith.constant 3 : index
    %c0_18 = arith.constant 0 : index
    %43 = vector.load %arg2[%c3, %c0_18] : memref<4x256xi32, #tpu.memory_space<vmem>>, vector<1x256xi32>
    %44 = vector.broadcast %5 : i32 to vector<1x256xi32>
    %45 = arith.subi %43, %44 : vector<1x256xi32>
    %46 = vector.broadcast %45 : vector<1x256xi32> to vector<512x256xi32>
    %47 = arith.cmpi eq, %3, %46 : vector<512x256xi32>
    %48 = arith.extui %47 : vector<512x256xi1> to vector<512x256xi32>
    %49 = arith.sitofp %48 : vector<512x256xi32> to vector<512x256xf32>
    %cst_19 = arith.constant dense<0.000000e+00> : vector<4x256xf32>
    %50 = tpu.matmul %4, %49, %cst_19 {dimension_numbers = #tpu.dot_dimension_numbers<[1], [0], [0], [1], [0, 0, 1, 1], [], []>} : vector<4x512xf32>, vector<512x256xf32>, vector<4x256xf32> -> vector<4x256xf32>
    %c3_20 = arith.constant 3 : index
    %c0_21 = arith.constant 0 : index
    %51 = vector.load %arg3[%c3_20, %c0_21] : memref<4x256xf32, #tpu.memory_space<vmem>>, vector<1x256xf32>
    %52 = vector.broadcast %51 : vector<1x256xf32> to vector<4x256xf32>
    %53 = arith.mulf %52, %50 : vector<4x256xf32>
    %54 = arith.addf %42, %53 : vector<4x256xf32>
    %c0_22 = arith.constant 0 : index
    %c0_23 = arith.constant 0 : index
    %55 = vector.load %arg6[%c0_22, %c0_23] : memref<4x256xf32, #tpu.memory_space<vmem>>, vector<4x256xf32>
    tpu.vector_store %arg6[%c0_22, %c0_23], %54 {strides = array<i32>} : memref<4x256xf32, #tpu.memory_space<vmem>>, vector<4x256xf32>,
    %c0_i32_24 = arith.constant 0 : i32
    %56 = arith.cmpi eq, %arg1, %c0_i32_24 : i32
    %57 = arith.extui %56 : i1 to i32
    %c0_i32_25 = arith.constant 0 : i32
    %58 = arith.cmpi ne, %57, %c0_i32_25 : i32
    scf.if %58 {
      %c0_26 = arith.constant 0 : index
      %c0_27 = arith.constant 0 : index
      %59 = vector.load %arg6[%c0_26, %c0_27] : memref<4x256xf32, #tpu.memory_space<vmem>>, vector<4x256xf32>
      %c0_28 = arith.constant 0 : index
      %c0_29 = arith.constant 0 : index
      %60 = vector.load %arg5[%c0_28, %c0_29] : memref<4x256xf32, #tpu.memory_space<vmem>>, vector<4x256xf32>
      tpu.vector_store %arg5[%c0_28, %c0_29], %59 {strides = array<i32>} : memref<4x256xf32, #tpu.memory_space<vmem>>, vector<4x256xf32>,
    } else {
    }
    return
  }
  func.func @transform_0(%arg0: i32, %arg1: i32) -> (i32, i32) {
    %c0_i32 = arith.constant 0 : i32
    %c0_i32_0 = arith.constant 0 : i32
    return %c0_i32, %arg0 : i32, i32
  }
  func.func @transform_1(%arg0: i32, %arg1: i32) -> (i32, i32) {
    %c0_i32 = arith.constant 0 : i32
    %c0_i32_0 = arith.constant 0 : i32
    return %c0_i32, %arg0 : i32, i32
  }
  func.func @transform_2(%arg0: i32, %arg1: i32) -> (i32, i32) {
    %c0_i32 = arith.constant 0 : i32
    %c0_i32_0 = arith.constant 0 : i32
    return %c0_i32, %arg1 : i32, i32
  }
  func.func @transform_3(%arg0: i32, %arg1: i32) -> (i32, i32) {
    %c0_i32 = arith.constant 0 : i32
    %c0_i32_0 = arith.constant 0 : i32
    return %c0_i32, %arg0 : i32, i32
  }
}

</mosaic_0001>

<bundles_post_ra>
// kernel: tpu_custom_call.1
= control target key start
LH: loop header
LB: loop body
LE: loop exit
PB: predicated region body
PF: predicated region fallthrough
CT: control target
= control target key end

     0   :  { %s6485_s0 = inlined_call_operand.hbm [shape: s32[4,512], index: 0, kind: input, shape index: {}]   ;;  %s6486_s1 = inlined_call_operand.hbm [shape: f32[4,512], index: 1, kind: input, shape index: {}]   ;;  %s6487_s2 = inlined_call_operand.hbm [shape: f32[4,512], index: 2, kind: input, shape index: {}]   ;;  %s6488_s3 = inlined_call_operand.hbm [shape: f32[4,512], index: 3, kind: output, shape index: {}]  }
   0x1   :  { %6541 = sst [smem:[#allocation37_spill]] %s6487_s2 }
   0x2   :  { %8 = vsyncpa [#allocation5], 0 }
   0x3   :  { %10 = vsyncpa [#allocation5 + $0x1], 0 }
   0x4   :  { %11 = vsyncpa [#allocation8], 0 }
   0x5   :  { %13 = vsyncpa [#allocation8 + $0x1], 0 }
   0x6   :  { %14 = vsyncpa [#allocation6], 0 }
   0x7   :  { %16 = vsyncpa [#allocation6 + $0x1], 0  ;;  %s4371_s12 = smov 0   ;;  %s4373_s13 = smov 0  }
   0x8   :  { %s4375_s14 = smov 0   ;;  %s4377_s15 = smov 0  }
   0x9   :  { %s4379_s16 = smov 0   ;;  %s4381_s17 = smov 0  }
   0xa LB: > { %6542 = sst [smem:[#allocation15_spill]] %s4343_s16  ;;  %s4402_s18 = sadd.s32 4294967295, %s4347_s17   ;;  %s4347_s17 = sphi %s4381_s17, %s22_s17   ;;  %s4343_s16 = sphi %s4379_s16, %s6629_s16   ;;  %s4339_s15 = sphi %s4377_s15, %s6628_s15   ;;  %s4335_s14 = sphi %s4375_s14, %s6632_s14   ;;  %s4331_s13 = sphi %s4373_s13, %s6631_s13   ;;  %s4327_s12 = sphi %s4371_s12, %s6630_s12  }
   0xb   : > { %s3035_s19 = sadd.s32 4294967294, %s4347_s17   ;;  %p54_p0 = scmp.ne.s32.totalorder %s4331_s13, %s4327_s12 }
   0xc   : > { %p55_p1 = scmp.eq.s32.totalorder %s4402_s18, 0  ;;  %p130_p2 = scmp.eq.s32.totalorder %s4402_s18, 1 }
   0xd   : > { %p136_p3 = scmp.eq.s32.totalorder %s3035_s19, 1  ;;  %p3036_p5 = scmp.ge.s32.totalorder %s4347_s17, 1 }
   0xe   : > { %p4411_p4 = por %p55_p1, %p54_p0  ;;  %p143_p7 = scmp.lt.s32.totalorder %s4347_s17, 3 }
   0xf   : > { %p4416_p6 = por %p136_p3, %p54_p0  ;;  %s6545_s2 = sld [smem:[#allocation37_spill]] }
  0x10   : > { %p4424_p8 = pnand %p3036_p5, %p143_p7  ;;  %p3038_p9 = scmp.ge.s32.totalorder %s4347_s17, 2 }
  0x11   : > { %s4349_s26 = smov [#allocation9]   ;;  %s34_s28 = sadd.s32 1, %s4343_s16 }
  0x12   : > { %p4098_p10 = pneg %p4424_p8  ;;  %s160_s27 = sshll.u32 %s4349_s26, 4  ;;  %s161_s27 = int_to_ptr.vmem [resolvable:$true] %s160_s27 }
  0x13   : > { %p36_p12 = scmp.ge.s32.totalorder %s34_s28, 2  ;;  %s41_s29 = sadd.s32 1, %s4335_s14 }
  0x14   : > { %p4099_p11 = pnand %p4098_p10, %p55_p1  ;;  %p48_p13 = scmp.ne.s32.totalorder %s4335_s14, %s4331_s13 }
  0x15   : > { %s158_s24 = sshll.u32 %s6545_s2, 4  ;;  %p49_p0 = scmp.eq.s32.totalorder %s4347_s17, 0  ;;  %s159_s24 = int_to_ptr.hbm [resolvable:$true] %s158_s24 }
  0x16   : > { %4101 = dma.hbm_to_vmem [thread:$0]  (!%p4099_p11), %s159_s24, 256, %s161_s27, [#allocation8]  }
  0x17   : > { %s6634_s28 = smov (%p36_p12, %s34_s28), 0  ;;  %p4440_p3 = por %p49_p0, %p48_p13 }
  0x18   : > { %6547 = sst [smem:[#allocation16_spill]] %s6634_s28  ;;  %p4446_p5 = por %p130_p2, %p48_p13 }
  0x19   : > { %s38_s5 = ssub.s32 %s4343_s16, %s6634_s28  ;;  %p4114_p7 = scmp.lt.s32.totalorder %s4347_s17, 2 }
  0x1a   : > { %p39_p10 = scmp.eq.s32.totalorder %s38_s5, 0  ;;  %s171_s6 = sand.u32 1, %s4335_s14  }
  0x1b   : > { %s3039_s7 = sshll.u32 %s171_s6, 3  ;;  %s4085_s9 = sshll.u32 %s4343_s16, 3 }
  0x1c   : > { %s4455_s8 = scalar_select %p39_p10, %s4335_s14, %s41_s29  }
  0x1d   : > { %s180_s19 = scalar_lea.hbm %s6485_s0, %s4085_s9  ;;  %s175_s22 = scalar_lea.vmem [#allocation4], %s3039_s7 }
  0x1e   : > { %6550 = sst [smem:[#allocation17_spill]] %s4455_s8  ;;  %s184_s23 = sshll.u32 %s175_s22, 4  ;;  %s185_s23 = int_to_ptr.vmem [resolvable:$true] %s184_s23 }
  0x1f   : > { %s182_s24 = sshll.u32 %s180_s19, 4  ;;  %p4103_p2 = pnand %p4114_p7, %p4440_p3  ;;  %s183_s24 = int_to_ptr.hbm [resolvable:$true] %s182_s24 }
  0x20   : > { %s200_s5 = scalar_lea.hbm %s6486_s1, %s4085_s9  ;;  %s191_s2 = sand.u32 1, %s4347_s17  }
  0x21   : > { %s172_s28 = scalar_lea.sflag [#allocation5], %s171_s6  ;;  %s202_s29 = sshll.u32 %s200_s5, 4  ;;  %s203_s29 = int_to_ptr.hbm [resolvable:$true] %s202_s29 }
  0x22   : > { %4105 = dma.hbm_to_vmem [thread:$0]  (!%p4103_p2), %s183_s24, 128, %s185_s23, %s172_s28  }
  0x23   : > { %s195_s16 = scalar_lea.vmem [#allocation7], %s3039_s7  ;;  %s192_s10 = scalar_lea.sflag [#allocation8], %s191_s2 }
  0x24   : > { %s204_s8 = sshll.u32 %s195_s16, 4  ;;  %213 = sbr.rel (%p4424_p8) target bundleno = 473 (0x1d9), region = 32  ;;  %s205_s8 = int_to_ptr.vmem [resolvable:$true] %s204_s8 }
  0x25   : > { %4108 = dma.hbm_to_vmem [thread:$0]  (!%p4103_p2), %s203_s29, 128, %s205_s8, %s192_s10  }
  0x29   : > { %s4470_s30 = sand.u32 1, %s4331_s13  }
  0x2a   : > { %s4473_s9 = sshll.u32 %s4470_s30, 3  ;;  %s216_s28 = scalar_lea.sflag [#allocation5], %s4470_s30 }
  0x2b   : > { %s4477_s6 = scalar_lea.vmem [#allocation4], %s4473_s9 }
  0x2c   : > { %4310 = dma.done.wait (%p4411_p4), %s216_s28, 128  }
  0x2d   : > { %4312 = vsyncadd (%p4411_p4), %s216_s28, 4294967168  ;;  %s225_s2 = sand.u32 1, %s4402_s18   ;;  %s4485_s25 = scalar_lea.vmem [#allocation7], %s4473_s9 }
  0x2e   : > { %s226_s16 = scalar_lea.sflag [#allocation8], %s225_s2 }
  0x2f   : > { %4314 = dma.done.wait (%p4411_p4), %s226_s16, 128  }
  0x30   : > { %4316 = vsyncadd (%p4411_p4), %s226_s16, 4294967168 }
  0x31   : > { %4318 = dma.done.wait (%p55_p1), [#allocation8], 256  }
  0x32   : > { %4320 = vsyncadd (%p55_p1), [#allocation8], 4294967040  ;;  %v271_v0 = vlaneseq  ;;  %v4519_v9 = vld [vmem:[%s4477_s6] ss:$4 sm:$0x3]  ;;  %v4350_v21 = vmov 1.0  }
  0x33   : > { %v4531_v13 = vperm.slane %v4519_v9, 0  ;;  %v4767_v47 = vld [vmem:[#allocation9 + $0x8] sm:$0xff]  ;;  %v4860_v58 = vld [vmem:[#allocation9] sm:$0xff]  ;;  %s4087_s18 = sshll.u32 %s4339_s15, 3  ;;  %s262_s15 = scalar_lea.vmem [#allocation10], %s4473_s9 }
  0x34   : > { %v4495_v1 = vshrl.u32 %v271_v0, 7  ;;  %6552 = vst [vmem:[#allocation19_spill] sm:$0xff] %v4767_v47  ;;  %s2917_s8 = scalar_lea.hbm %s6488_s3, %s4087_s18  ;;  %s2919_s11 = sshll.u32 %s262_s15, 4  ;;  %s2920_s11 = int_to_ptr.vmem [resolvable:$true] %s2919_s11 }
  0x35   : > { %990 = vst [vmem:[#allocation1 + $0x10] ss:$2 sm:$0xff] %v4767_v47  ;;  %s2921_s19 = sshll.u32 %s2917_s8, 4  ;;  %s2906_s22 = scalar_lea.sflag [#allocation6], %s4470_s30  ;;  %s2922_s19 = int_to_ptr.hbm [resolvable:$true] %s2921_s19 }
  0x36   : > { %v4498_v2 = vadd.s32 376, %v4495_v1  ;;  %v4501_v3 = vadd.s32 368, %v4495_v1  ;;  %v4504_v4 = vadd.s32 504, %v4495_v1  ;;  %v4507_v5 = vadd.s32 120, %v4495_v1  ;;  %6562 = vst [vmem:[#allocation29_spill] sm:$0xff] %v4860_v58  ;;  %s4271_s23 = sshra.s32 %s2922_s19, 4  ;;  %s4272_s23 = int_to_ptr.hbm [resolvable:$true] %s4271_s23 }
  0x37   : > { %v4510_v6 = vadd.s32 248, %v4495_v1  ;;  %v4513_v7 = vadd.s32 360, %v4495_v1  ;;  %v4516_v8 = vadd.s32 496, %v4495_v1  ;;  %v4522_v10 = vadd.s32 112, %v4495_v1  ;;  %988 = vst [vmem:[#allocation1] ss:$2 sm:$0xff] %v4860_v58  ;;  %p4278_p11 = scmp.lt.s32.totalorder %s4272_s23, %s6488_s3 }
  0x38   : > { %v4525_v11 = vadd.s32 240, %v4495_v1  ;;  %v4528_v12 = vadd.s32 352, %v4495_v1  ;;  %v4534_v14 = vadd.s32 488, %v4495_v1  ;;  %v4537_v15 = vadd.s32 104, %v4495_v1  ;;  %s4273_s24 = scalar_lea.hbm %s4272_s23, 8  ;;  %s4277_s5 = scalar_lea.hbm %s6488_s3, 16 }
  0x39   : > { %v4540_v16 = vadd.s32 232, %v4495_v1  ;;  %v4543_v17 = vadd.s32 344, %v4495_v1  ;;  %v4546_v18 = vadd.s32 480, %v4495_v1  ;;  %v4549_v19 = vadd.s32 96, %v4495_v1  ;;  %p4274_p1 = scmp.ne.s32.totalorder %s4272_s23, %s4273_s24  ;;  %p4279_p12 = scmp.lt.s32.totalorder %s4277_s5, %s4273_s24 }
  0x3a   : > { %v4552_v20 = vadd.s32 224, %v4495_v1  ;;  %vm696_vm0 = vcmp.eq.s32.totalorder %v4498_v2, %v4531_v13  ;;  %vm694_vm1 = vcmp.eq.s32.totalorder %v4501_v3, %v4531_v13  ;;  %vm728_vm2 = vcmp.eq.s32.totalorder %v4504_v4, %v4531_v13 }
  0x3b   : > { %vm632_vm3 = vcmp.eq.s32.totalorder %v4507_v5, %v4531_v13  ;;  %3210 = vmatpush.msk.msra.mxu2 %vm696_vm0, %v4350_v21  ;;  %3226 = vmatpush.msk.msra.mxu3 %vm728_vm2, %v4350_v21  ;;  %vm664_vm4 = vcmp.eq.s32.totalorder %v4510_v6, %v4531_v13  ;;  %vm726_vm5 = vcmp.eq.s32.totalorder %v4516_v8, %v4531_v13  ;;  %v4569_v22 = vadd.s32 336, %v4495_v1  ;;  %p4275_p4 = pnand %p4274_p1, %p4446_p5  ;;  %p4280_p13 = por %p4279_p12, %p4278_p11 }
  0x3c   : > { %v4572_v23 = vadd.s32 472, %v4495_v1  ;;  %3178 = vmatpush.msk.msra.mxu0 %vm632_vm3, %v4350_v21  ;;  %3194 = vmatpush.msk.msra.mxu1 %vm664_vm4, %v4350_v21  ;;  %vm692_vm6 = vcmp.eq.s32.totalorder %v4513_v7, %v4531_v13  ;;  %vm630_vm7 = vcmp.eq.s32.totalorder %v4522_v10, %v4531_v13  ;;  %vm662_vm8 = vcmp.eq.s32.totalorder %v4525_v11, %v4531_v13 }
  0x3d   : > { %v4583_v24 = vadd.s32 88, %v4495_v1  ;;  %3211 = vmatpush.msk.msra.mxu2 %vm694_vm1, %v4350_v21  ;;  %3227 = vmatpush.msk.msra.mxu3 %vm726_vm5, %v4350_v21  ;;  %vm724_vm9 = vcmp.eq.s32.totalorder %v4534_v14, %v4531_v13  ;;  %vm628_vm10 = vcmp.eq.s32.totalorder %v4537_v15, %v4531_v13  ;;  %vm660_vm11 = vcmp.eq.s32.totalorder %v4540_v16, %v4531_v13  ;;  %p4276_p8 = pneg %p4275_p4 }
  0x3e   : > { %v4597_v25 = vadd.s32 216, %v4495_v1  ;;  %3179 = vmatpush.msk.msra.mxu0 %vm630_vm7, %v4350_v21  ;;  %3195 = vmatpush.msk.msra.mxu1 %vm662_vm8, %v4350_v21  ;;  %vm690_vm12 = vcmp.eq.s32.totalorder %v4528_v12, %v4531_v13  ;;  %vm722_vm13 = vcmp.eq.s32.totalorder %v4546_v18, %v4531_v13  ;;  %v4606_v26 = vadd.s32 464, %v4495_v1 }
  0x3f   : > { %v4609_v27 = vadd.s32 80, %v4495_v1  ;;  %3212 = vmatpush.msk.msra.mxu2 %vm692_vm6, %v4350_v21  ;;  %3228 = vmatpush.msk.msra.mxu3 %vm724_vm9, %v4350_v21  ;;  %vm626_vm14 = vcmp.eq.s32.totalorder %v4549_v19, %v4531_v13  ;;  %vm658_vm15 = vcmp.eq.s32.totalorder %v4552_v20, %v4531_v13  ;;  %v4621_v28 = vadd.s32 208, %v4495_v1  ;;  %p4281_p0 = pnand %p4280_p13, %p4276_p8 }
  0x40   : > { %3180 = vmatpush.msk.msra.mxu0 %vm628_vm10, %v4350_v21  ;;  %3196 = vmatpush.msk.msra.mxu1 %vm660_vm11, %v4350_v21  ;;  %vm688_vm0 = vcmp.eq.s32.totalorder %v4543_v17, %v4531_v13  ;;  %vm720_vm1 = vcmp.eq.s32.totalorder %v4572_v23, %v4531_v13  ;;  %v4630_v29 = vadd.s32 328, %v4495_v1  ;;  %v4633_v30 = vadd.s32 456, %v4495_v1 }
  0x41   : > { %3213 = vmatpush.msk.msra.mxu2 %vm690_vm12, %v4350_v21  ;;  %3229 = vmatpush.msk.msra.mxu3 %vm722_vm13, %v4350_v21  ;;  %vm624_vm2 = vcmp.eq.s32.totalorder %v4583_v24, %v4531_v13  ;;  %vm656_vm3 = vcmp.eq.s32.totalorder %v4597_v25, %v4531_v13  ;;  %v4642_v31 = vadd.s32 72, %v4495_v1  ;;  %v4645_v32 = vadd.s32 200, %v4495_v1 }
  0x42   : > { %3181 = vmatpush.msk.msra.mxu0 %vm626_vm14, %v4350_v21  ;;  %3197 = vmatpush.msk.msra.mxu1 %vm658_vm15, %v4350_v21  ;;  %vm686_vm4 = vcmp.eq.s32.totalorder %v4569_v22, %v4531_v13  ;;  %vm718_vm5 = vcmp.eq.s32.totalorder %v4606_v26, %v4531_v13  ;;  %vm622_vm6 = vcmp.eq.s32.totalorder %v4609_v27, %v4531_v13  ;;  %v4656_v33 = vadd.s32 320, %v4495_v1 }
  0x43   : > { %3214 = vmatpush.msk.msra.mxu2 %vm688_vm0, %v4350_v21  ;;  %3230 = vmatpush.msk.msra.mxu3 %vm720_vm1, %v4350_v21  ;;  %vm654_vm7 = vcmp.eq.s32.totalorder %v4621_v28, %v4531_v13  ;;  %v4669_v34 = vadd.s32 448, %v4495_v1  ;;  %v4672_v35 = vadd.s32 64, %v4495_v1  ;;  %v4675_v36 = vadd.s32 192, %v4495_v1 }
  0x44   : > { %3182 = vmatpush.msk.msra.mxu0 %vm624_vm2, %v4350_v21  ;;  %3198 = vmatpush.msk.msra.mxu1 %vm656_vm3, %v4350_v21  ;;  %vm684_vm8 = vcmp.eq.s32.totalorder %v4630_v29, %v4531_v13  ;;  %vm716_vm9 = vcmp.eq.s32.totalorder %v4633_v30, %v4531_v13  ;;  %v4690_v37 = vadd.s32 312, %v4495_v1  ;;  %v4693_v38 = vadd.s32 440, %v4495_v1 }
  0x45   : > { %3215 = vmatpush.msk.msra.mxu2 %vm686_vm4, %v4350_v21  ;;  %3231 = vmatpush.msk.msra.mxu3 %vm718_vm5, %v4350_v21  ;;  %vm620_vm10 = vcmp.eq.s32.totalorder %v4642_v31, %v4531_v13  ;;  %vm652_vm11 = vcmp.eq.s32.totalorder %v4645_v32, %v4531_v13  ;;  %v4708_v39 = vadd.s32 56, %v4495_v1  ;;  %v4711_v40 = vadd.s32 184, %v4495_v1 }
  0x46   : > { %3183 = vmatpush.msk.msra.mxu0 %vm622_vm6, %v4350_v21  ;;  %3199 = vmatpush.msk.msra.mxu1 %vm654_vm7, %v4350_v21  ;;  %vm682_vm12 = vcmp.eq.s32.totalorder %v4656_v33, %v4531_v13  ;;  %vm714_vm13 = vcmp.eq.s32.totalorder %v4669_v34, %v4531_v13  ;;  %vm618_vm14 = vcmp.eq.s32.totalorder %v4672_v35, %v4531_v13  ;;  %v4728_v41 = vadd.s32 304, %v4495_v1 }
  0x47   : > { %3216 = vmatpush.msk.msra.mxu2 %vm684_vm8, %v4350_v21  ;;  %3232 = vmatpush.msk.msra.mxu3 %vm716_vm9, %v4350_v21  ;;  %vm650_vm15 = vcmp.eq.s32.totalorder %v4675_v36, %v4531_v13  ;;  %v4741_v42 = vadd.s32 432, %v4495_v1  ;;  %v4744_v43 = vadd.s32 48, %v4495_v1  ;;  %v4747_v44 = vadd.s32 176, %v4495_v1 }
  0x48   : > { %3184 = vmatpush.msk.msra.mxu0 %vm620_vm10, %v4350_v21  ;;  %3200 = vmatpush.msk.msra.mxu1 %vm652_vm11, %v4350_v21  ;;  %vm680_vm0 = vcmp.eq.s32.totalorder %v4690_v37, %v4531_v13  ;;  %vm712_vm1 = vcmp.eq.s32.totalorder %v4693_v38, %v4531_v13  ;;  %v4762_v45 = vadd.s32 296, %v4495_v1  ;;  %v4765_v46 = vadd.s32 424, %v4495_v1 }
  0x49   : > { %3217 = vmatpush.msk.msra.mxu2 %vm682_vm12, %v4350_v21  ;;  %3233 = vmatpush.msk.msra.mxu3 %vm714_vm13, %v4350_v21  ;;  %vm616_vm2 = vcmp.eq.s32.totalorder %v4708_v39, %v4531_v13  ;;  %vm648_vm3 = vcmp.eq.s32.totalorder %v4711_v40, %v4531_v13  ;;  %v4782_v48 = vadd.s32 40, %v4495_v1  ;;  %v4785_v49 = vadd.s32 168, %v4495_v1 }
  0x4a   : > { %6551 = vst [vmem:[#allocation18_spill] sm:$0xff] %v4765_v46  ;;  %3185 = vmatpush.msk.msra.mxu0 %vm618_vm14, %v4350_v21  ;;  %3201 = vmatpush.msk.msra.mxu1 %vm650_vm15, %v4350_v21  ;;  %vm678_vm4 = vcmp.eq.s32.totalorder %v4728_v41, %v4531_v13  ;;  %vm710_vm5 = vcmp.eq.s32.totalorder %v4741_v42, %v4531_v13  ;;  %v4802_v50 = vadd.s32 288, %v4495_v1  ;;  %v4815_v51 = vadd.s32 416, %v4495_v1 }
  0x4b   : > { %6553 = vst [vmem:[#allocation20_spill] sm:$0xff] %v4782_v48  ;;  %vm614_vm6 = vcmp.eq.s32.totalorder %v4744_v43, %v4531_v13  ;;  %3218 = vmatpush.msk.msra.mxu2 %vm680_vm0, %v4350_v21  ;;  %3234 = vmatpush.msk.msra.mxu3 %vm712_vm1, %v4350_v21  ;;  %vm646_vm7 = vcmp.eq.s32.totalorder %v4747_v44, %v4531_v13  ;;  %v4818_v52 = vadd.s32 32, %v4495_v1  ;;  %v4821_v53 = vadd.s32 160, %v4495_v1 }
  0x4c   : > { %6554 = vst [vmem:[#allocation21_spill] sm:$0xff] %v4785_v49  ;;  %3186 = vmatpush.msk.msra.mxu0 %vm616_vm2, %v4350_v21  ;;  %3202 = vmatpush.msk.msra.mxu1 %vm648_vm3, %v4350_v21  ;;  %vm676_vm8 = vcmp.eq.s32.totalorder %v4762_v45, %v4531_v13  ;;  %vm708_vm9 = vcmp.eq.s32.totalorder %v4765_v46, %v4531_v13  ;;  %v4837_v54 = vadd.s32 280, %v4495_v1  ;;  %v4840_v55 = vadd.s32 408, %v4495_v1 }
  0x4d   : > { %6555 = vst [vmem:[#allocation22_spill] sm:$0xff] %v4802_v50  ;;  %3219 = vmatpush.msk.msra.mxu2 %vm678_vm4, %v4350_v21  ;;  %3235 = vmatpush.msk.msra.mxu3 %vm710_vm5, %v4350_v21  ;;  %vm612_vm10 = vcmp.eq.s32.totalorder %v4782_v48, %v4531_v13  ;;  %vm644_vm11 = vcmp.eq.s32.totalorder %v4785_v49, %v4531_v13  ;;  %v4855_v56 = vadd.s32 24, %v4495_v1  ;;  %v4858_v57 = vadd.s32 152, %v4495_v1  ;;  %v4962_v49 = vld.sshfl [vmem:[#allocation1 + $0x10] sm:$0xff pattern:$0x75316420] }
  0x4e   : > { %6556 = vst [vmem:[#allocation23_spill] sm:$0xff] %v4815_v51  ;;  %3187 = vmatpush.msk.msra.mxu0 %vm614_vm6, %v4350_v21  ;;  %3203 = vmatpush.msk.msra.mxu1 %vm646_vm7, %v4350_v21  ;;  %vm674_vm12 = vcmp.eq.s32.totalorder %v4802_v50, %v4531_v13  ;;  %vm706_vm13 = vcmp.eq.s32.totalorder %v4815_v51, %v4531_v13  ;;  %v4877_v59 = vadd.s32 272, %v4495_v1  ;;  %v4890_v60 = vadd.s32 400, %v4495_v1 }
  0x4f   : > { %6557 = vst [vmem:[#allocation24_spill] sm:$0xff] %v4818_v52  ;;  %vm610_vm14 = vcmp.eq.s32.totalorder %v4818_v52, %v4531_v13  ;;  %3220 = vmatpush.msk.msra.mxu2 %vm676_vm8, %v4350_v21  ;;  %3236 = vmatpush.msk.msra.mxu3 %vm708_vm9, %v4350_v21  ;;  %vm642_vm15 = vcmp.eq.s32.totalorder %v4821_v53, %v4531_v13  ;;  %v4893_v61 = vadd.s32 16, %v4495_v1  ;;  %v4896_v62 = vadd.s32 144, %v4495_v1 }
  0x50   : > { %6558 = vst [vmem:[#allocation25_spill] sm:$0xff] %v4821_v53  ;;  %3188 = vmatpush.msk.msra.mxu0 %vm612_vm10, %v4350_v21  ;;  %3204 = vmatpush.msk.msra.mxu1 %vm644_vm11, %v4350_v21  ;;  %vm672_vm0 = vcmp.eq.s32.totalorder %v4837_v54, %v4531_v13  ;;  %vm704_vm1 = vcmp.eq.s32.totalorder %v4840_v55, %v4531_v13  ;;  %v4912_v63 = vadd.s32 264, %v4495_v1  ;;  %v4915_v0 = vadd.s32 392, %v4495_v1 }
  0x51   : > { %6559 = vst [vmem:[#allocation26_spill] sm:$0xff] %v4837_v54  ;;  %3221 = vmatpush.msk.msra.mxu2 %vm674_vm12, %v4350_v21  ;;  %3237 = vmatpush.msk.msra.mxu3 %vm706_vm13, %v4350_v21  ;;  %vm608_vm2 = vcmp.eq.s32.totalorder %v4855_v56, %v4531_v13  ;;  %vm640_vm3 = vcmp.eq.s32.totalorder %v4858_v57, %v4531_v13  ;;  %v4945_v51 = vadd.s32 256, %v4495_v1  ;;  %v4948_v54 = vadd.s32 136, %v4495_v1 }
  0x52   : > { %6560 = vst [vmem:[#allocation27_spill] sm:$0xff] %v4840_v55  ;;  %v4930_v55 = vadd.s32 8, %v4495_v1  ;;  %3189 = vmatpush.msk.msra.mxu0 %vm610_vm14, %v4350_v21  ;;  %3205 = vmatpush.msk.msra.mxu1 %vm642_vm15, %v4350_v21  ;;  %vm670_vm4 = vcmp.eq.s32.totalorder %v4877_v59, %v4531_v13  ;;  %vm702_vm5 = vcmp.eq.s32.totalorder %v4890_v60, %v4531_v13  ;;  %v4957_v53 = vperm.slane %v4519_v9, 1 }
  0x53   : > { %6561 = vst [vmem:[#allocation28_spill] sm:$0xff] %v4855_v56  ;;  %3222 = vmatpush.msk.msra.mxu2 %vm672_vm0, %v4350_v21  ;;  %3238 = vmatpush.msk.msra.mxu3 %vm704_vm1, %v4350_v21  ;;  %vm606_vm6 = vcmp.eq.s32.totalorder %v4893_v61, %v4531_v13  ;;  %vm638_vm7 = vcmp.eq.s32.totalorder %v4896_v62, %v4531_v13  ;;  %v4960_v52 = vadd.s32 384, %v4495_v1  ;;  %v4977_v9 = vadd.s32 128, %v4495_v1 }
  0x54   : > { %6563 = vst [vmem:[#allocation30_spill] sm:$0xff] %v4877_v59  ;;  %3190 = vmatpush.msk.msra.mxu0 %vm608_vm2, %v4350_v21  ;;  %3206 = vmatpush.msk.msra.mxu1 %vm640_vm3, %v4350_v21  ;;  %vm668_vm8 = vcmp.eq.s32.totalorder %v4912_v63, %v4531_v13  ;;  %vm700_vm9 = vcmp.eq.s32.totalorder %v4915_v0, %v4531_v13 }
  0x55   : > { %6564 = vst [vmem:[#allocation31_spill] sm:$0xff] %v4893_v61  ;;  %3223 = vmatpush.msk.msra.mxu2 %vm670_vm4, %v4350_v21  ;;  %3239 = vmatpush.msk.msra.mxu3 %vm702_vm5, %v4350_v21  ;;  %vm604_vm10 = vcmp.eq.s32.totalorder %v4930_v55, %v4531_v13  ;;  %vm636_vm11 = vcmp.eq.s32.totalorder %v4948_v54, %v4531_v13 }
  0x56   : > { %6565 = vst [vmem:[#allocation32_spill] sm:$0xff] %v4912_v63  ;;  %3191 = vmatpush.msk.msra.mxu0 %vm606_vm6, %v4350_v21  ;;  %3207 = vmatpush.msk.msra.mxu1 %vm638_vm7, %v4350_v21  ;;  %vm666_vm12 = vcmp.eq.s32.totalorder %v4945_v51, %v4531_v13  ;;  %vm698_vm13 = vcmp.eq.s32.totalorder %v4960_v52, %v4531_v13 }
  0x57   : > { %6566 = vst [vmem:[#allocation33_spill] sm:$0xff] %v4930_v55  ;;  %v5006_v55 = vld.sshfl [vmem:[#allocation1] sm:$0xff pattern:$0x75316420]  ;;  %3224 = vmatpush.msk.msra.mxu2 %vm668_vm8, %v4350_v21  ;;  %3240 = vmatpush.msk.msra.mxu3 %vm700_vm9, %v4350_v21  ;;  %vm697_vm14 = vcmp.eq.s32.totalorder %v4498_v2, %v4957_v53  ;;  %vm729_vm15 = vcmp.eq.s32.totalorder %v4504_v4, %v4957_v53 }
  0x58   : > { %6567 = vst [vmem:[#allocation34_spill] sm:$0xff] %v4945_v51  ;;  %3192 = vmatpush.msk.msra.mxu0 %vm604_vm10, %v4350_v21  ;;  %3208 = vmatpush.msk.msra.mxu1 %vm636_vm11, %v4350_v21  ;;  %vm602_vm0 = vcmp.eq.s32.totalorder %v4495_v1, %v4531_v13  ;;  %vm634_vm1 = vcmp.eq.s32.totalorder %v4977_v9, %v4531_v13  ;;  %v6570_v13 = vld [vmem:[#allocation21_spill] sm:$0xff] }
  0x59   : > { %6568 = vst [vmem:[#allocation35_spill] sm:$0xff] %v4948_v54  ;;  %v5008_v54 = vld.sshfl [vmem:[#allocation1 + $0x8] sm:$0xff pattern:$0x75316420]  ;;  %3225 = vmatpush.msk.msra.mxu2 %vm666_vm12, %v4350_v21  ;;  %3241 = vmatpush.msk.msra.mxu3 %vm698_vm13, %v4350_v21  ;;  %vm695_vm2 = vcmp.eq.s32.totalorder %v4501_v3, %v4957_v53  ;;  %vm633_vm3 = vcmp.eq.s32.totalorder %v4507_v5, %v4957_v53 }
  0x5a   : > { %6569 = vst [vmem:[#allocation36_spill] sm:$0xff] %v4962_v49  ;;  %v4979_v49 = vld.sshfl [vmem:[#allocation1 + $0x18] sm:$0xff pattern:$0x75316420]  ;;  %vm665_vm4 = vcmp.eq.s32.totalorder %v4510_v6, %v4957_v53  ;;  %vm727_vm5 = vcmp.eq.s32.totalorder %v4516_v8, %v4957_v53  ;;  %3193 = vmatpush.msk.msra.mxu0 %vm602_vm0, %v4350_v21  ;;  %3209 = vmatpush.msk.msra.mxu1 %vm634_vm1, %v4350_v21 }
  0x5b   : > { %1565 = vst [vmem:[#allocation1 + $0x10] ss:$2 sm:$0xff] %v4767_v47  ;;  %3274 = vmatpush.msk.msrb.mxu2 %vm697_vm14, %v4350_v21  ;;  %3290 = vmatpush.msk.msrb.mxu3 %vm729_vm15, %v4350_v21  ;;  %vm693_vm6 = vcmp.eq.s32.totalorder %v4513_v7, %v4957_v53  ;;  %vm631_vm7 = vcmp.eq.s32.totalorder %v4522_v10, %v4957_v53  ;;  %v6572_v47 = vld [vmem:[#allocation23_spill] sm:$0xff] }
  0x5c   : > { %1563 = vst [vmem:[#allocation1] ss:$2 sm:$0xff] %v4860_v58  ;;  %3242 = vmatpush.msk.msrb.mxu0 %vm633_vm3, %v4350_v21  ;;  %vm663_vm8 = vcmp.eq.s32.totalorder %v4525_v11, %v4957_v53  ;;  %vm725_vm9 = vcmp.eq.s32.totalorder %v4534_v14, %v4957_v53  ;;  %3258 = vmatpush.msk.msrb.mxu1 %vm665_vm4, %v4350_v21  ;;  %v6571_v58 = vld [vmem:[#allocation26_spill] sm:$0xff] }
  0x5d   : > { %3275 = vmatpush.msk.msrb.mxu2 %vm695_vm2, %v4350_v21  ;;  %3291 = vmatpush.msk.msrb.mxu3 %vm727_vm5, %v4350_v21  ;;  %vm691_vm10 = vcmp.eq.s32.totalorder %v4528_v12, %v4957_v53  ;;  %vm629_vm11 = vcmp.eq.s32.totalorder %v4537_v15, %v4957_v53  ;;  %vm661_vm12 = vcmp.eq.s32.totalorder %v4540_v16, %v4957_v53 }
  0x5e   : > { %3243 = vmatpush.msk.msrb.mxu0 %vm631_vm7, %v4350_v21  ;;  %vm723_vm13 = vcmp.eq.s32.totalorder %v4546_v18, %v4957_v53  ;;  %3259 = vmatpush.msk.msrb.mxu1 %vm663_vm8, %v4350_v21  ;;  %vm689_vm14 = vcmp.eq.s32.totalorder %v4543_v17, %v4957_v53  ;;  %vm627_vm15 = vcmp.eq.s32.totalorder %v4549_v19, %v4957_v53 }
  0x5f   : > { %3276 = vmatpush.msk.msrb.mxu2 %vm693_vm6, %v4350_v21  ;;  %3292 = vmatpush.msk.msrb.mxu3 %vm725_vm9, %v4350_v21  ;;  %vm659_vm0 = vcmp.eq.s32.totalorder %v4552_v20, %v4957_v53  ;;  %vm721_vm1 = vcmp.eq.s32.totalorder %v4572_v23, %v4957_v53  ;;  %vm687_vm2 = vcmp.eq.s32.totalorder %v4569_v22, %v4957_v53 }
  0x60   : > { %3244 = vmatpush.msk.msrb.mxu0 %vm629_vm11, %v4350_v21  ;;  %3260 = vmatpush.msk.msrb.mxu1 %vm661_vm12, %v4350_v21  ;;  %vm625_vm3 = vcmp.eq.s32.totalorder %v4583_v24, %v4957_v53  ;;  %vm657_vm4 = vcmp.eq.s32.totalorder %v4597_v25, %v4957_v53  ;;  %vm719_vm5 = vcmp.eq.s32.totalorder %v4606_v26, %v4957_v53 }
  0x61   : > { %3277 = vmatpush.msk.msrb.mxu2 %vm691_vm10, %v4350_v21  ;;  %3293 = vmatpush.msk.msrb.mxu3 %vm723_vm13, %v4350_v21  ;;  %vm685_vm6 = vcmp.eq.s32.totalorder %v4630_v29, %v4957_v53  ;;  %vm623_vm7 = vcmp.eq.s32.totalorder %v4609_v27, %v4957_v53  ;;  %vm655_vm8 = vcmp.eq.s32.totalorder %v4621_v28, %v4957_v53 }
  0x62   : > { %3245 = vmatpush.msk.msrb.mxu0 %vm627_vm15, %v4350_v21  ;;  %3261 = vmatpush.msk.msrb.mxu1 %vm659_vm0, %v4350_v21  ;;  %vm717_vm9 = vcmp.eq.s32.totalorder %v4633_v30, %v4957_v53  ;;  %vm683_vm10 = vcmp.eq.s32.totalorder %v4656_v33, %v4957_v53  ;;  %vm621_vm11 = vcmp.eq.s32.totalorder %v4642_v31, %v4957_v53 }
  0x63   : > { %3278 = vmatpush.msk.msrb.mxu2 %vm689_vm14, %v4350_v21  ;;  %3294 = vmatpush.msk.msrb.mxu3 %vm721_vm1, %v4350_v21  ;;  %vm653_vm12 = vcmp.eq.s32.totalorder %v4645_v32, %v4957_v53  ;;  %vm715_vm13 = vcmp.eq.s32.totalorder %v4669_v34, %v4957_v53  ;;  %vm681_vm14 = vcmp.eq.s32.totalorder %v4690_v37, %v4957_v53 }
  0x64   : > { %3246 = vmatpush.msk.msrb.mxu0 %vm625_vm3, %v4350_v21  ;;  %3262 = vmatpush.msk.msrb.mxu1 %vm657_vm4, %v4350_v21  ;;  %vm619_vm15 = vcmp.eq.s32.totalorder %v4672_v35, %v4957_v53  ;;  %vm651_vm0 = vcmp.eq.s32.totalorder %v4675_v36, %v4957_v53  ;;  %vm713_vm1 = vcmp.eq.s32.totalorder %v4693_v38, %v4957_v53 }
  0x65   : > { %3279 = vmatpush.msk.msrb.mxu2 %vm687_vm2, %v4350_v21  ;;  %3295 = vmatpush.msk.msrb.mxu3 %vm719_vm5, %v4350_v21  ;;  %vm679_vm2 = vcmp.eq.s32.totalorder %v4728_v41, %v4957_v53  ;;  %vm617_vm3 = vcmp.eq.s32.totalorder %v4708_v39, %v4957_v53  ;;  %vm649_vm4 = vcmp.eq.s32.totalorder %v4711_v40, %v4957_v53 }
  0x66   : > { %3247 = vmatpush.msk.msrb.mxu0 %vm623_vm7, %v4350_v21  ;;  %3263 = vmatpush.msk.msrb.mxu1 %vm655_vm8, %v4350_v21  ;;  %vm711_vm5 = vcmp.eq.s32.totalorder %v4741_v42, %v4957_v53  ;;  %vm615_vm7 = vcmp.eq.s32.totalorder %v4744_v43, %v4957_v53  ;;  %vm647_vm8 = vcmp.eq.s32.totalorder %v4747_v44, %v4957_v53 }
  0x67   : > { %3280 = vmatpush.msk.msrb.mxu2 %vm685_vm6, %v4350_v21  ;;  %3296 = vmatpush.msk.msrb.mxu3 %vm717_vm9, %v4350_v21  ;;  %vm677_vm6 = vcmp.eq.s32.totalorder %v4762_v45, %v4957_v53  ;;  %vm709_vm9 = vcmp.eq.s32.totalorder %v4765_v46, %v4957_v53  ;;  %v6574_v46 = vld [vmem:[#allocation36_spill] sm:$0xff] }
  0x68   : > { %3248 = vmatpush.msk.msrb.mxu0 %vm621_vm11, %v4350_v21  ;;  %3264 = vmatpush.msk.msrb.mxu1 %vm653_vm12, %v4350_v21  ;;  %vm613_vm11 = vcmp.eq.s32.totalorder %v4782_v48, %v4957_v53  ;;  %vm645_vm12 = vcmp.eq.s32.totalorder %v6570_v13, %v4957_v53  ;;  %v6573_v48 = vld [vmem:[#allocation24_spill] sm:$0xff]  ;;  %v6575_v13 = vld [vmem:[#allocation25_spill] sm:$0xff] }
  0x69   : > { %3281 = vmatpush.msk.msrb.mxu2 %vm683_vm10, %v4350_v21  ;;  %3297 = vmatpush.msk.msrb.mxu3 %vm715_vm13, %v4350_v21  ;;  %vm675_vm10 = vcmp.eq.s32.totalorder %v4802_v50, %v4957_v53  ;;  %vm673_vm13 = vcmp.eq.s32.totalorder %v6571_v58, %v4957_v53  ;;  %v5170_v58 = vld [vmem:[%s4477_s6 + $0x1] ss:$4 sm:$0x3] }
  0x6a   : > { %3249 = vmatpush.msk.msrb.mxu0 %vm619_vm15, %v4350_v21  ;;  %3265 = vmatpush.msk.msrb.mxu1 %vm651_vm0, %v4350_v21  ;;  %vm611_vm15 = vcmp.eq.s32.totalorder %v6573_v48, %v4957_v53  ;;  %vm643_vm0 = vcmp.eq.s32.totalorder %v6575_v13, %v4957_v53 }
  0x6b   : > { %3282 = vmatpush.msk.msrb.mxu2 %vm681_vm14, %v4350_v21  ;;  %3298 = vmatpush.msk.msrb.mxu3 %vm713_vm1, %v4350_v21  ;;  %vm707_vm14 = vcmp.eq.s32.totalorder %v6572_v47, %v4957_v53  ;;  %vm671_vm1 = vcmp.eq.s32.totalorder %v4877_v59, %v4957_v53  ;;  %v6576_v47 = vld [vmem:[#allocation27_spill] sm:$0xff]  ;;  %v5187_v59 = vperm.slane %v5170_v58, 0 }
  0x6c   : > { %3250 = vmatpush.msk.msrb.mxu0 %vm617_vm3, %v4350_v21  ;;  %3266 = vmatpush.msk.msrb.mxu1 %vm649_vm4, %v4350_v21  ;;  %vm609_vm3 = vcmp.eq.s32.totalorder %v4855_v56, %v4957_v53  ;;  %vm641_vm4 = vcmp.eq.s32.totalorder %v4858_v57, %v4957_v53 }
  0x6d   : > { %3283 = vmatpush.msk.msrb.mxu2 %vm679_vm2, %v4350_v21  ;;  %3299 = vmatpush.msk.msrb.mxu3 %vm711_vm5, %v4350_v21  ;;  %vm705_vm2 = vcmp.eq.s32.totalorder %v6576_v47, %v4957_v53  ;;  %vm669_vm5 = vcmp.eq.s32.totalorder %v4912_v63, %v4957_v53 }
  0x6e   : > { %3251 = vmatpush.msk.msrb.mxu0 %vm615_vm7, %v4350_v21  ;;  %3267 = vmatpush.msk.msrb.mxu1 %vm647_vm8, %v4350_v21  ;;  %vm607_vm7 = vcmp.eq.s32.totalorder %v4893_v61, %v4957_v53  ;;  %vm639_vm8 = vcmp.eq.s32.totalorder %v4896_v62, %v4957_v53  ;;  %v6577_v61 = vld [vmem:[#allocation33_spill] sm:$0xff] }
  0x6f   : > { %3284 = vmatpush.msk.msrb.mxu2 %vm677_vm6, %v4350_v21  ;;  %3300 = vmatpush.msk.msrb.mxu3 %vm709_vm9, %v4350_v21  ;;  %vm703_vm6 = vcmp.eq.s32.totalorder %v4890_v60, %v4957_v53  ;;  %vm667_vm9 = vcmp.eq.s32.totalorder %v4945_v51, %v4957_v53  ;;  %v6578_v51 = vld [vmem:[#allocation35_spill] sm:$0xff] }
  0x70   : > { %3252 = vmatpush.msk.msrb.mxu0 %vm613_vm11, %v4350_v21  ;;  %1055 = vmatmul.f32.vlgmr.msra.gmra.mxu2 %v6574_v46  ;;  %vm1273_vm11 = vcmp.eq.s32.totalorder %v4498_v2, %v5187_v59 }
  0x71   : > { %3285 = vmatpush.msk.msrb.mxu2 %vm675_vm10, %v4350_v21  ;;  %3268 = vmatpush.msk.msrb.mxu1 %vm645_vm12, %v4350_v21  ;;  %vm701_vm10 = vcmp.eq.s32.totalorder %v4915_v0, %v4957_v53  ;;  %vm605_vm12 = vcmp.eq.s32.totalorder %v6577_v61, %v4957_v53 }
  0x72   : > { %3301 = vmatpush.msk.msrb.mxu3 %vm707_vm14, %v4350_v21  ;;  %3253 = vmatpush.msk.msrb.mxu0 %vm611_vm15, %v4350_v21  ;;  %vm699_vm14 = vcmp.eq.s32.totalorder %v4960_v52, %v4957_v53  ;;  %vm1271_vm15 = vcmp.eq.s32.totalorder %v4501_v3, %v5187_v59 }
  0x73   : > { %3286 = vmatpush.msk.msrb.mxu2 %vm673_vm13, %v4350_v21  ;;  %1075 = vmatmul.f32.vlgmr.msra.gmra.mxu3 %v4979_v49  ;;  %vm637_vm13 = vcmp.eq.s32.totalorder %v6578_v51, %v4957_v53 }
  0x74   : > { %3269 = vmatpush.msk.msrb.mxu1 %vm643_vm0, %v4350_v21  ;;  %3302 = vmatpush.msk.msrb.mxu3 %vm705_vm2, %v4350_v21  ;;  %vm1305_vm0 = vcmp.eq.s32.totalorder %v4504_v4, %v5187_v59  ;;  %vm635_vm2 = vcmp.eq.s32.totalorder %v4977_v9, %v4957_v53 }
  0x75   : > { %3287 = vmatpush.msk.msrb.mxu2 %vm671_vm1, %v4350_v21  ;;  %1015 = vmatmul.f32.vlgmr.msra.gmra.mxu0 %v5006_v55  ;;  %vm603_vm1 = vcmp.eq.s32.totalorder %v4495_v1, %v4957_v53  ;;  %v6581_v53 = vld [vmem:[#allocation21_spill] sm:$0xff] }
  0x76   : > { %1035 = vmatmul.f32.vlgmr.msra.gmra.mxu1 %v5008_v54  ;;  %3254 = vmatpush.msk.msrb.mxu0 %vm609_vm3, %v4350_v21  ;;  %vm1209_vm3 = vcmp.eq.s32.totalorder %v4507_v5, %v5187_v59 }
  0x77   : > { %3270 = vmatpush.msk.msrb.mxu1 %vm641_vm4, %v4350_v21  ;;  %3288 = vmatpush.msk.msrb.mxu2 %vm669_vm5, %v4350_v21  ;;  %vm1241_vm4 = vcmp.eq.s32.totalorder %v4510_v6, %v5187_v59  ;;  %vm1269_vm5 = vcmp.eq.s32.totalorder %v4513_v7, %v5187_v59 }
  0x78   : > { %3303 = vmatpush.msk.msrb.mxu3 %vm703_vm6, %v4350_v21  ;;  %3255 = vmatpush.msk.msrb.mxu0 %vm607_vm7, %v4350_v21  ;;  %vm1303_vm6 = vcmp.eq.s32.totalorder %v4516_v8, %v5187_v59  ;;  %vm1207_vm7 = vcmp.eq.s32.totalorder %v4522_v10, %v5187_v59 }
  0x79   : > { %3271 = vmatpush.msk.msrb.mxu1 %vm639_vm8, %v4350_v21  ;;  %3289 = vmatpush.msk.msrb.mxu2 %vm667_vm9, %v4350_v21  ;;  %vm1239_vm8 = vcmp.eq.s32.totalorder %v4525_v11, %v5187_v59  ;;  %vm1267_vm9 = vcmp.eq.s32.totalorder %v4528_v12, %v5187_v59 }
  0x7a   : > { %3304 = vmatpush.msk.msrb.mxu3 %vm701_vm10, %v4350_v21  ;;  %1135 = vmatmul.f32.vlgmr.msrb.gmra.mxu2 %v6574_v46  ;;  %vm1301_vm10 = vcmp.eq.s32.totalorder %v4534_v14, %v5187_v59  ;;  %v6579_v46 = vld [vmem:[#allocation18_spill] sm:$0xff] }
  0x7b   : > { %3467 = vmatpush.msk.msra.mxu2 %vm1273_vm11, %v4350_v21  ;;  %3256 = vmatpush.msk.msrb.mxu0 %vm605_vm12, %v4350_v21  ;;  %vm1205_vm11 = vcmp.eq.s32.totalorder %v4537_v15, %v5187_v59  ;;  %vm1237_vm12 = vcmp.eq.s32.totalorder %v4540_v16, %v5187_v59 }
  0x7c   : > { %3272 = vmatpush.msk.msrb.mxu1 %vm637_vm13, %v4350_v21  ;;  %3305 = vmatpush.msk.msrb.mxu3 %vm699_vm14, %v4350_v21  ;;  %vm1265_vm13 = vcmp.eq.s32.totalorder %v4543_v17, %v5187_v59  ;;  %vm1299_vm14 = vcmp.eq.s32.totalorder %v4546_v18, %v5187_v59 }
  0x7d   : > { %1155 = vmatmul.f32.vlgmr.msrb.gmra.mxu3 %v4979_v49  ;;  %3468 = vmatpush.msk.msra.mxu2 %vm1271_vm15, %v4350_v21  ;;  %vm1203_vm15 = vcmp.eq.s32.totalorder %v4549_v19, %v5187_v59  ;;  %v6580_v49 = vld [vmem:[#allocation20_spill] sm:$0xff] }
  0x7e   : > { %3483 = vmatpush.msk.msra.mxu3 %vm1305_vm0, %v4350_v21  ;;  %3257 = vmatpush.msk.msrb.mxu0 %vm603_vm1, %v4350_v21  ;;  %vm1235_vm0 = vcmp.eq.s32.totalorder %v4552_v20, %v5187_v59  ;;  %vm1263_vm1 = vcmp.eq.s32.totalorder %v4569_v22, %v5187_v59 }
  0x7f   : > { %3273 = vmatpush.msk.msrb.mxu1 %vm635_vm2, %v4350_v21  ;;  %1095 = vmatmul.f32.vlgmr.msrb.gmra.mxu0 %v5006_v55  ;;  %vm1297_vm2 = vcmp.eq.s32.totalorder %v4572_v23, %v5187_v59  ;;  %v6583_v55 = vld [vmem:[#allocation23_spill] sm:$0xff] }
  0x80   : > { %1115 = vmatmul.f32.vlgmr.msrb.gmra.mxu1 %v5008_v54  ;;  %3435 = vmatpush.msk.msra.mxu0 %vm1209_vm3, %v4350_v21  ;;  %vm1201_vm3 = vcmp.eq.s32.totalorder %v4583_v24, %v5187_v59  ;;  %v6582_v54 = vld [vmem:[#allocation26_spill] sm:$0xff] }
  0x81   : > { %3451 = vmatpush.msk.msra.mxu1 %vm1241_vm4, %v4350_v21  ;;  %3469 = vmatpush.msk.msra.mxu2 %vm1269_vm5, %v4350_v21  ;;  %vm1233_vm4 = vcmp.eq.s32.totalorder %v4597_v25, %v5187_v59  ;;  %vm1261_vm5 = vcmp.eq.s32.totalorder %v4630_v29, %v5187_v59 }
  0x82   : > { %3484 = vmatpush.msk.msra.mxu3 %vm1303_vm6, %v4350_v21  ;;  %3436 = vmatpush.msk.msra.mxu0 %vm1207_vm7, %v4350_v21  ;;  %vm1295_vm6 = vcmp.eq.s32.totalorder %v4606_v26, %v5187_v59  ;;  %vm1199_vm7 = vcmp.eq.s32.totalorder %v4609_v27, %v5187_v59 }
  0x83   : > { %3452 = vmatpush.msk.msra.mxu1 %vm1239_vm8, %v4350_v21  ;;  %3470 = vmatpush.msk.msra.mxu2 %vm1267_vm9, %v4350_v21  ;;  %vm1231_vm8 = vcmp.eq.s32.totalorder %v4621_v28, %v5187_v59  ;;  %vm1259_vm9 = vcmp.eq.s32.totalorder %v4656_v33, %v5187_v59 }
  0x84   : > { %3485 = vmatpush.msk.msra.mxu3 %vm1301_vm10, %v4350_v21  ;;  %3437 = vmatpush.msk.msra.mxu0 %vm1205_vm11, %v4350_v21  ;;  %vm1293_vm10 = vcmp.eq.s32.totalorder %v4633_v30, %v5187_v59  ;;  %vm1197_vm11 = vcmp.eq.s32.totalorder %v4642_v31, %v5187_v59 }
  0x85   : > { %3453 = vmatpush.msk.msra.mxu1 %vm1237_vm12, %v4350_v21  ;;  %3471 = vmatpush.msk.msra.mxu2 %vm1265_vm13, %v4350_v21  ;;  %vm1229_vm12 = vcmp.eq.s32.totalorder %v4645_v32, %v5187_v59  ;;  %vm1257_vm13 = vcmp.eq.s32.totalorder %v4690_v37, %v5187_v59 }
  0x86   : > { %3486 = vmatpush.msk.msra.mxu3 %vm1299_vm14, %v4350_v21  ;;  %3438 = vmatpush.msk.msra.mxu0 %vm1203_vm15, %v4350_v21  ;;  %vm1291_vm14 = vcmp.eq.s32.totalorder %v4669_v34, %v5187_v59  ;;  %vm1195_vm15 = vcmp.eq.s32.totalorder %v4672_v35, %v5187_v59 }
  0x87   : > { %3454 = vmatpush.msk.msra.mxu1 %vm1235_vm0, %v4350_v21  ;;  %3472 = vmatpush.msk.msra.mxu2 %vm1263_vm1, %v4350_v21  ;;  %vm1227_vm0 = vcmp.eq.s32.totalorder %v4675_v36, %v5187_v59  ;;  %vm1255_vm1 = vcmp.eq.s32.totalorder %v4728_v41, %v5187_v59 }
  0x88   : > { %3487 = vmatpush.msk.msra.mxu3 %vm1297_vm2, %v4350_v21  ;;  %3439 = vmatpush.msk.msra.mxu0 %vm1201_vm3, %v4350_v21  ;;  %vm1289_vm2 = vcmp.eq.s32.totalorder %v4693_v38, %v5187_v59  ;;  %vm1193_vm3 = vcmp.eq.s32.totalorder %v4708_v39, %v5187_v59 }
  0x89   : > { %3455 = vmatpush.msk.msra.mxu1 %vm1233_vm4, %v4350_v21  ;;  %3473 = vmatpush.msk.msra.mxu2 %vm1261_vm5, %v4350_v21  ;;  %vm1225_vm4 = vcmp.eq.s32.totalorder %v4711_v40, %v5187_v59  ;;  %vm1253_vm5 = vcmp.eq.s32.totalorder %v4762_v45, %v5187_v59 }
  0x8a   : > { %3488 = vmatpush.msk.msra.mxu3 %vm1295_vm6, %v4350_v21  ;;  %3440 = vmatpush.msk.msra.mxu0 %vm1199_vm7, %v4350_v21  ;;  %vm1287_vm6 = vcmp.eq.s32.totalorder %v4741_v42, %v5187_v59  ;;  %vm1191_vm7 = vcmp.eq.s32.totalorder %v4744_v43, %v5187_v59 }
  0x8b   : > { %3456 = vmatpush.msk.msra.mxu1 %vm1231_vm8, %v4350_v21  ;;  %3474 = vmatpush.msk.msra.mxu2 %vm1259_vm9, %v4350_v21  ;;  %vm1223_vm8 = vcmp.eq.s32.totalorder %v4747_v44, %v5187_v59  ;;  %vm1251_vm9 = vcmp.eq.s32.totalorder %v4802_v50, %v5187_v59 }
  0x8c   : > { %3489 = vmatpush.msk.msra.mxu3 %vm1293_vm10, %v4350_v21  ;;  %3441 = vmatpush.msk.msra.mxu0 %vm1197_vm11, %v4350_v21  ;;  %vm1285_vm10 = vcmp.eq.s32.totalorder %v6579_v46, %v5187_v59  ;;  %vm1189_vm11 = vcmp.eq.s32.totalorder %v6580_v49, %v5187_v59 }
  0x8d   : > { %3457 = vmatpush.msk.msra.mxu1 %vm1229_vm12, %v4350_v21  ;;  %3475 = vmatpush.msk.msra.mxu2 %vm1257_vm13, %v4350_v21  ;;  %vm1221_vm12 = vcmp.eq.s32.totalorder %v6581_v53, %v5187_v59  ;;  %vm1249_vm13 = vcmp.eq.s32.totalorder %v6582_v54, %v5187_v59  ;;  %v6584_v53 = vld [vmem:[#allocation30_spill] sm:$0xff] }
  0x8e   : > { %3490 = vmatpush.msk.msra.mxu3 %vm1291_vm14, %v4350_v21  ;;  %3442 = vmatpush.msk.msra.mxu0 %vm1195_vm15, %v4350_v21  ;;  %vm1283_vm14 = vcmp.eq.s32.totalorder %v6583_v55, %v5187_v59  ;;  %vm1187_vm15 = vcmp.eq.s32.totalorder %v6573_v48, %v5187_v59  ;;  %v5380_v48 = vperm.slane %v5170_v58, 1  ;;  %v6585_v58 = vld [vmem:[#allocation31_spill] sm:$0xff] }
  0x8f   : > { %3458 = vmatpush.msk.msra.mxu1 %vm1227_vm0, %v4350_v21  ;;  %3476 = vmatpush.msk.msra.mxu2 %vm1255_vm1, %v4350_v21  ;;  %vm1219_vm0 = vcmp.eq.s32.totalorder %v6575_v13, %v5187_v59  ;;  %vm1247_vm1 = vcmp.eq.s32.totalorder %v6584_v53, %v5187_v59  ;;  %v5388_v53 = vld.sshfl [vmem:[#allocation1 + $0x10] sm:$0xff pattern:$0x75316420]  ;;  %v5390_v13 = vld.sshfl [vmem:[#allocation1 + $0x18] sm:$0xff pattern:$0x75316420] }
  0x90   : > { %3491 = vmatpush.msk.msra.mxu3 %vm1289_vm2, %v4350_v21  ;;  %3443 = vmatpush.msk.msra.mxu0 %vm1193_vm3, %v4350_v21  ;;  %vm1281_vm2 = vcmp.eq.s32.totalorder %v6576_v47, %v5187_v59  ;;  %vm1185_vm3 = vcmp.eq.s32.totalorder %v4855_v56, %v5187_v59  ;;  %v6586_v56 = vld [vmem:[#allocation19_spill] sm:$0xff] }
  0x91   : > { %3459 = vmatpush.msk.msra.mxu1 %vm1225_vm4, %v4350_v21  ;;  %3477 = vmatpush.msk.msra.mxu2 %vm1253_vm5, %v4350_v21  ;;  %vm1217_vm4 = vcmp.eq.s32.totalorder %v4858_v57, %v5187_v59  ;;  %vm1245_vm5 = vcmp.eq.s32.totalorder %v4912_v63, %v5187_v59  ;;  %2140 = vst [vmem:[#allocation1 + $0x10] ss:$2 sm:$0xff] %v6586_v56  ;;  %v6587_v63 = vld [vmem:[#allocation34_spill] sm:$0xff]  ;;  %v5411_v56 = vld.sshfl [vmem:[#allocation1] sm:$0xff pattern:$0x75316420] }
  0x92   : > { %3492 = vmatpush.msk.msra.mxu3 %vm1287_vm6, %v4350_v21  ;;  %3444 = vmatpush.msk.msra.mxu0 %vm1191_vm7, %v4350_v21  ;;  %vm1279_vm6 = vcmp.eq.s32.totalorder %v4890_v60, %v5187_v59  ;;  %vm1183_vm7 = vcmp.eq.s32.totalorder %v6585_v58, %v5187_v59  ;;  %v5413_v58 = vld.sshfl [vmem:[#allocation1 + $0x8] sm:$0xff pattern:$0x75316420] }
  0x93   : > { %3460 = vmatpush.msk.msra.mxu1 %vm1223_vm8, %v4350_v21  ;;  %3478 = vmatpush.msk.msra.mxu2 %vm1251_vm9, %v4350_v21  ;;  %vm1215_vm8 = vcmp.eq.s32.totalorder %v4896_v62, %v5187_v59  ;;  %vm1243_vm9 = vcmp.eq.s32.totalorder %v6587_v63, %v5187_v59  ;;  %v6588_v63 = vld [vmem:[#allocation29_spill] sm:$0xff] }
  0x94   : > { %3493 = vmatpush.msk.msra.mxu3 %vm1285_vm10, %v4350_v21  ;;  %3445 = vmatpush.msk.msra.mxu0 %vm1189_vm11, %v4350_v21  ;;  %vm1277_vm10 = vcmp.eq.s32.totalorder %v4915_v0, %v5187_v59  ;;  %vm1274_vm11 = vcmp.eq.s32.totalorder %v4498_v2, %v5380_v48  ;;  %2138 = vst [vmem:[#allocation1] ss:$2 sm:$0xff] %v6588_v63  ;;  %v6590_v63 = vld [vmem:[#allocation24_spill] sm:$0xff] }
  0x95   : > { %3461 = vmatpush.msk.msra.mxu1 %vm1221_vm12, %v4350_v21  ;;  %3479 = vmatpush.msk.msra.mxu2 %vm1249_vm13, %v4350_v21  ;;  %vm1181_vm12 = vcmp.eq.s32.totalorder %v6577_v61, %v5187_v59  ;;  %vm1213_vm13 = vcmp.eq.s32.totalorder %v6578_v51, %v5187_v59 }
  0x96   : > { %3494 = vmatpush.msk.msra.mxu3 %vm1283_vm14, %v4350_v21  ;;  %3446 = vmatpush.msk.msra.mxu0 %vm1187_vm15, %v4350_v21  ;;  %vm1275_vm14 = vcmp.eq.s32.totalorder %v4960_v52, %v5187_v59  ;;  %vm1272_vm15 = vcmp.eq.s32.totalorder %v4501_v3, %v5380_v48 }
  0x97   : > { %3462 = vmatpush.msk.msra.mxu1 %vm1219_vm0, %v4350_v21  ;;  %3480 = vmatpush.msk.msra.mxu2 %vm1247_vm1, %v4350_v21  ;;  %vm1306_vm0 = vcmp.eq.s32.totalorder %v4504_v4, %v5380_v48  ;;  %vm1179_vm1 = vcmp.eq.s32.totalorder %v4495_v1, %v5187_v59 }
  0x98   : > { %3495 = vmatpush.msk.msra.mxu3 %vm1281_vm2, %v4350_v21  ;;  %3447 = vmatpush.msk.msra.mxu0 %vm1185_vm3, %v4350_v21  ;;  %vm1211_vm2 = vcmp.eq.s32.totalorder %v4977_v9, %v5187_v59  ;;  %vm1210_vm3 = vcmp.eq.s32.totalorder %v4507_v5, %v5380_v48  ;;  %v6589_v59 = vld [vmem:[#allocation21_spill] sm:$0xff] }
  0x99   : > { %3463 = vmatpush.msk.msra.mxu1 %vm1217_vm4, %v4350_v21  ;;  %3481 = vmatpush.msk.msra.mxu2 %vm1245_vm5, %v4350_v21  ;;  %vm1242_vm4 = vcmp.eq.s32.totalorder %v4510_v6, %v5380_v48  ;;  %vm1270_vm5 = vcmp.eq.s32.totalorder %v4513_v7, %v5380_v48 }
  0x9a   : > { %3496 = vmatpush.msk.msra.mxu3 %vm1279_vm6, %v4350_v21  ;;  %3448 = vmatpush.msk.msra.mxu0 %vm1183_vm7, %v4350_v21  ;;  %vm1304_vm6 = vcmp.eq.s32.totalorder %v4516_v8, %v5380_v48  ;;  %vm1208_vm7 = vcmp.eq.s32.totalorder %v4522_v10, %v5380_v48 }
  0x9b   : > { %3464 = vmatpush.msk.msra.mxu1 %vm1215_vm8, %v4350_v21  ;;  %3482 = vmatpush.msk.msra.mxu2 %vm1243_vm9, %v4350_v21  ;;  %vm1240_vm8 = vcmp.eq.s32.totalorder %v4525_v11, %v5380_v48  ;;  %vm1268_vm9 = vcmp.eq.s32.totalorder %v4528_v12, %v5380_v48 }
  0x9c   : > { %3497 = vmatpush.msk.msra.mxu3 %vm1277_vm10, %v4350_v21  ;;  %3449 = vmatpush.msk.msra.mxu0 %vm1181_vm12, %v4350_v21  ;;  %vm1302_vm10 = vcmp.eq.s32.totalorder %v4534_v14, %v5380_v48  ;;  %vm1238_vm12 = vcmp.eq.s32.totalorder %v4540_v16, %v5380_v48 }
  0x9d   : > { %3531 = vmatpush.msk.msrb.mxu2 %vm1274_vm11, %v4350_v21  ;;  %3465 = vmatpush.msk.msra.mxu1 %vm1213_vm13, %v4350_v21  ;;  %vm1206_vm11 = vcmp.eq.s32.totalorder %v4537_v15, %v5380_v48  ;;  %vm1266_vm13 = vcmp.eq.s32.totalorder %v4543_v17, %v5380_v48 }
  0x9e   : > { %3498 = vmatpush.msk.msra.mxu3 %vm1275_vm14, %v4350_v21  ;;  %3450 = vmatpush.msk.msra.mxu0 %vm1179_vm1, %v4350_v21  ;;  %vm1300_vm14 = vcmp.eq.s32.totalorder %v4546_v18, %v5380_v48  ;;  %vm1264_vm1 = vcmp.eq.s32.totalorder %v4569_v22, %v5380_v48 }
  0x9f   : > { %3532 = vmatpush.msk.msrb.mxu2 %vm1272_vm15, %v4350_v21  ;;  %3466 = vmatpush.msk.msra.mxu1 %vm1211_vm2, %v4350_v21  ;;  %vm1204_vm15 = vcmp.eq.s32.totalorder %v4549_v19, %v5380_v48  ;;  %vm1298_vm2 = vcmp.eq.s32.totalorder %v4572_v23, %v5380_v48 }
  0xa0   : > { %3547 = vmatpush.msk.msrb.mxu3 %vm1306_vm0, %v4350_v21  ;;  %3499 = vmatpush.msk.msrb.mxu0 %vm1210_vm3, %v4350_v21  ;;  %vm1236_vm0 = vcmp.eq.s32.totalorder %v4552_v20, %v5380_v48  ;;  %vm1202_vm3 = vcmp.eq.s32.totalorder %v4583_v24, %v5380_v48 }
  0xa1   : > { %3515 = vmatpush.msk.msrb.mxu1 %vm1242_vm4, %v4350_v21  ;;  %3533 = vmatpush.msk.msrb.mxu2 %vm1270_vm5, %v4350_v21  ;;  %vm1234_vm4 = vcmp.eq.s32.totalorder %v4597_v25, %v5380_v48  ;;  %vm1262_vm5 = vcmp.eq.s32.totalorder %v4630_v29, %v5380_v48 }
  0xa2   : > { %3548 = vmatpush.msk.msrb.mxu3 %vm1304_vm6, %v4350_v21  ;;  %3500 = vmatpush.msk.msrb.mxu0 %vm1208_vm7, %v4350_v21  ;;  %vm1296_vm6 = vcmp.eq.s32.totalorder %v4606_v26, %v5380_v48  ;;  %vm1200_vm7 = vcmp.eq.s32.totalorder %v4609_v27, %v5380_v48 }
  0xa3   : > { %3516 = vmatpush.msk.msrb.mxu1 %vm1240_vm8, %v4350_v21  ;;  %3534 = vmatpush.msk.msrb.mxu2 %vm1268_vm9, %v4350_v21  ;;  %vm1232_vm8 = vcmp.eq.s32.totalorder %v4621_v28, %v5380_v48  ;;  %vm1260_vm9 = vcmp.eq.s32.totalorder %v4656_v33, %v5380_v48 }
  0xa4   : > { %3549 = vmatpush.msk.msrb.mxu3 %vm1302_vm10, %v4350_v21  ;;  %3501 = vmatpush.msk.msrb.mxu0 %vm1206_vm11, %v4350_v21  ;;  %vm1294_vm10 = vcmp.eq.s32.totalorder %v4633_v30, %v5380_v48  ;;  %vm1198_vm11 = vcmp.eq.s32.totalorder %v4642_v31, %v5380_v48 }
  0xa5   : > { %3517 = vmatpush.msk.msrb.mxu1 %vm1238_vm12, %v4350_v21  ;;  %3535 = vmatpush.msk.msrb.mxu2 %vm1266_vm13, %v4350_v21  ;;  %vm1230_vm12 = vcmp.eq.s32.totalorder %v4645_v32, %v5380_v48  ;;  %vm1258_vm13 = vcmp.eq.s32.totalorder %v4690_v37, %v5380_v48 }
  0xa6   : > { %3550 = vmatpush.msk.msrb.mxu3 %vm1300_vm14, %v4350_v21  ;;  %3502 = vmatpush.msk.msrb.mxu0 %vm1204_vm15, %v4350_v21  ;;  %vm1292_vm14 = vcmp.eq.s32.totalorder %v4669_v34, %v5380_v48  ;;  %vm1196_vm15 = vcmp.eq.s32.totalorder %v4672_v35, %v5380_v48 }
  0xa7   : > { %3518 = vmatpush.msk.msrb.mxu1 %vm1236_vm0, %v4350_v21  ;;  %3536 = vmatpush.msk.msrb.mxu2 %vm1264_vm1, %v4350_v21  ;;  %vm1228_vm0 = vcmp.eq.s32.totalorder %v4675_v36, %v5380_v48  ;;  %vm1256_vm1 = vcmp.eq.s32.totalorder %v4728_v41, %v5380_v48 }
  0xa8   : > { %3551 = vmatpush.msk.msrb.mxu3 %vm1298_vm2, %v4350_v21  ;;  %3503 = vmatpush.msk.msrb.mxu0 %vm1202_vm3, %v4350_v21  ;;  %vm1290_vm2 = vcmp.eq.s32.totalorder %v4693_v38, %v5380_v48  ;;  %vm1194_vm3 = vcmp.eq.s32.totalorder %v4708_v39, %v5380_v48 }
  0xa9   : > { %3519 = vmatpush.msk.msrb.mxu1 %vm1234_vm4, %v4350_v21  ;;  %3537 = vmatpush.msk.msrb.mxu2 %vm1262_vm5, %v4350_v21  ;;  %vm1226_vm4 = vcmp.eq.s32.totalorder %v4711_v40, %v5380_v48  ;;  %vm1254_vm5 = vcmp.eq.s32.totalorder %v4762_v45, %v5380_v48 }
  0xaa   : > { %3552 = vmatpush.msk.msrb.mxu3 %vm1296_vm6, %v4350_v21  ;;  %3504 = vmatpush.msk.msrb.mxu0 %vm1200_vm7, %v4350_v21  ;;  %vm1288_vm6 = vcmp.eq.s32.totalorder %v4741_v42, %v5380_v48  ;;  %vm1192_vm7 = vcmp.eq.s32.totalorder %v4744_v43, %v5380_v48 }
  0xab   : > { %3520 = vmatpush.msk.msrb.mxu1 %vm1232_vm8, %v4350_v21  ;;  %3538 = vmatpush.msk.msrb.mxu2 %vm1260_vm9, %v4350_v21  ;;  %vm1224_vm8 = vcmp.eq.s32.totalorder %v4747_v44, %v5380_v48  ;;  %vm1252_vm9 = vcmp.eq.s32.totalorder %v4802_v50, %v5380_v48 }
  0xac   : > { %3553 = vmatpush.msk.msrb.mxu3 %vm1294_vm10, %v4350_v21  ;;  %3505 = vmatpush.msk.msrb.mxu0 %vm1198_vm11, %v4350_v21  ;;  %vm1286_vm10 = vcmp.eq.s32.totalorder %v6579_v46, %v5380_v48  ;;  %vm1190_vm11 = vcmp.eq.s32.totalorder %v6580_v49, %v5380_v48  ;;  %v6592_v49 = vld [vmem:[#allocation30_spill] sm:$0xff] }
  0xad   : > { %3521 = vmatpush.msk.msrb.mxu1 %vm1230_vm12, %v4350_v21  ;;  %3539 = vmatpush.msk.msrb.mxu2 %vm1258_vm13, %v4350_v21  ;;  %vm1222_vm12 = vcmp.eq.s32.totalorder %v6589_v59, %v5380_v48  ;;  %vm1250_vm13 = vcmp.eq.s32.totalorder %v6582_v54, %v5380_v48  ;;  %v6591_v59 = vld [vmem:[#allocation25_spill] sm:$0xff]  ;;  %v5581_v54 = vld [vmem:[%s4477_s6 + $0x2] ss:$4 sm:$0x3] }
  0xae   : > { %3554 = vmatpush.msk.msrb.mxu3 %vm1292_vm14, %v4350_v21  ;;  %3506 = vmatpush.msk.msrb.mxu0 %vm1196_vm15, %v4350_v21  ;;  %vm1284_vm14 = vcmp.eq.s32.totalorder %v6583_v55, %v5380_v48  ;;  %vm1188_vm15 = vcmp.eq.s32.totalorder %v6590_v63, %v5380_v48  ;;  %v6593_v63 = vld [vmem:[#allocation28_spill] sm:$0xff] }
  0xaf   : > { %3522 = vmatpush.msk.msrb.mxu1 %vm1228_vm0, %v4350_v21  ;;  %3540 = vmatpush.msk.msrb.mxu2 %vm1256_vm1, %v4350_v21  ;;  %vm1220_vm0 = vcmp.eq.s32.totalorder %v6591_v59, %v5380_v48  ;;  %vm1248_vm1 = vcmp.eq.s32.totalorder %v6592_v49, %v5380_v48  ;;  %v6594_v49 = vld [vmem:[#allocation32_spill] sm:$0xff]  ;;  %v5598_v59 = vperm.slane %v5581_v54, 0 }
  0xb0   : > { %3555 = vmatpush.msk.msrb.mxu3 %vm1290_vm2, %v4350_v21  ;;  %3507 = vmatpush.msk.msrb.mxu0 %vm1194_vm3, %v4350_v21  ;;  %vm1282_vm2 = vcmp.eq.s32.totalorder %v6576_v47, %v5380_v48  ;;  %vm1186_vm3 = vcmp.eq.s32.totalorder %v6593_v63, %v5380_v48  ;;  %v6595_v63 = vld [vmem:[#allocation31_spill] sm:$0xff] }
  0xb1   : > { %3523 = vmatpush.msk.msrb.mxu1 %vm1226_vm4, %v4350_v21  ;;  %3541 = vmatpush.msk.msrb.mxu2 %vm1254_vm5, %v4350_v21  ;;  %vm1218_vm4 = vcmp.eq.s32.totalorder %v4858_v57, %v5380_v48  ;;  %vm1246_vm5 = vcmp.eq.s32.totalorder %v6594_v49, %v5380_v48  ;;  %v6596_v49 = vld [vmem:[#allocation34_spill] sm:$0xff] }
  0xb2   : > { %3556 = vmatpush.msk.msrb.mxu3 %vm1288_vm6, %v4350_v21  ;;  %3508 = vmatpush.msk.msrb.mxu0 %vm1192_vm7, %v4350_v21  ;;  %vm1280_vm6 = vcmp.eq.s32.totalorder %v4890_v60, %v5380_v48  ;;  %vm1184_vm7 = vcmp.eq.s32.totalorder %v6595_v63, %v5380_v48 }
  0xb3   : > { %3524 = vmatpush.msk.msrb.mxu1 %vm1224_vm8, %v4350_v21  ;;  %3542 = vmatpush.msk.msrb.mxu2 %vm1252_vm9, %v4350_v21  ;;  %vm1216_vm8 = vcmp.eq.s32.totalorder %v4896_v62, %v5380_v48  ;;  %vm1244_vm9 = vcmp.eq.s32.totalorder %v6596_v49, %v5380_v48 }
  0xb4   : > { %3557 = vmatpush.msk.msrb.mxu3 %vm1286_vm10, %v4350_v21  ;;  %1630 = vmatmul.f32.vlgmr.msra.gmra.mxu2 %v5388_v53  ;;  %vm1278_vm10 = vcmp.eq.s32.totalorder %v4915_v0, %v5380_v48 }
  0xb5   : > { %3509 = vmatpush.msk.msrb.mxu0 %vm1190_vm11, %v4350_v21  ;;  %3525 = vmatpush.msk.msrb.mxu1 %vm1222_vm12, %v4350_v21  ;;  %vm1848_vm11 = vcmp.eq.s32.totalorder %v4498_v2, %v5598_v59  ;;  %vm1182_vm12 = vcmp.eq.s32.totalorder %v6577_v61, %v5380_v48 }
  0xb6   : > { %3543 = vmatpush.msk.msrb.mxu2 %vm1250_vm13, %v4350_v21  ;;  %3558 = vmatpush.msk.msrb.mxu3 %vm1284_vm14, %v4350_v21  ;;  %vm1214_vm13 = vcmp.eq.s32.totalorder %v6578_v51, %v5380_v48  ;;  %vm1276_vm14 = vcmp.eq.s32.totalorder %v4960_v52, %v5380_v48 }
  0xb7   : > { %1650 = vmatmul.f32.vlgmr.msra.gmra.mxu3 %v5390_v13  ;;  %3510 = vmatpush.msk.msrb.mxu0 %vm1188_vm15, %v4350_v21  ;;  %vm1846_vm15 = vcmp.eq.s32.totalorder %v4501_v3, %v5598_v59 }
  0xb8   : > { %3526 = vmatpush.msk.msrb.mxu1 %vm1220_vm0, %v4350_v21  ;;  %3544 = vmatpush.msk.msrb.mxu2 %vm1248_vm1, %v4350_v21  ;;  %vm1880_vm0 = vcmp.eq.s32.totalorder %v4504_v4, %v5598_v59  ;;  %vm1180_vm1 = vcmp.eq.s32.totalorder %v4495_v1, %v5380_v48 }
  0xb9   : > { %3559 = vmatpush.msk.msrb.mxu3 %vm1282_vm2, %v4350_v21  ;;  %1590 = vmatmul.f32.vlgmr.msra.gmra.mxu0 %v5411_v56  ;;  %vm1212_vm2 = vcmp.eq.s32.totalorder %v4977_v9, %v5380_v48  ;;  %v6597_v48 = vld [vmem:[#allocation20_spill] sm:$0xff] }
  0xba   : > { %1610 = vmatmul.f32.vlgmr.msra.gmra.mxu1 %v5413_v58  ;;  %3511 = vmatpush.msk.msrb.mxu0 %vm1186_vm3, %v4350_v21  ;;  %vm1784_vm3 = vcmp.eq.s32.totalorder %v4507_v5, %v5598_v59 }
  0xbb   : > { %3527 = vmatpush.msk.msrb.mxu1 %vm1218_vm4, %v4350_v21  ;;  %3545 = vmatpush.msk.msrb.mxu2 %vm1246_vm5, %v4350_v21  ;;  %vm1816_vm4 = vcmp.eq.s32.totalorder %v4510_v6, %v5598_v59  ;;  %vm1844_vm5 = vcmp.eq.s32.totalorder %v4513_v7, %v5598_v59 }
  0xbc   : > { %3560 = vmatpush.msk.msrb.mxu3 %vm1280_vm6, %v4350_v21  ;;  %3512 = vmatpush.msk.msrb.mxu0 %vm1184_vm7, %v4350_v21  ;;  %vm1878_vm6 = vcmp.eq.s32.totalorder %v4516_v8, %v5598_v59  ;;  %vm1782_vm7 = vcmp.eq.s32.totalorder %v4522_v10, %v5598_v59 }
  0xbd   : > { %3528 = vmatpush.msk.msrb.mxu1 %vm1216_vm8, %v4350_v21  ;;  %3546 = vmatpush.msk.msrb.mxu2 %vm1244_vm9, %v4350_v21  ;;  %vm1814_vm8 = vcmp.eq.s32.totalorder %v4525_v11, %v5598_v59  ;;  %vm1842_vm9 = vcmp.eq.s32.totalorder %v4528_v12, %v5598_v59 }
  0xbe   : > { %3561 = vmatpush.msk.msrb.mxu3 %vm1278_vm10, %v4350_v21  ;;  %1710 = vmatmul.f32.vlgmr.msrb.gmra.mxu2 %v5388_v53  ;;  %vm1876_vm10 = vcmp.eq.s32.totalorder %v4534_v14, %v5598_v59  ;;  %v6600_v53 = vld [vmem:[#allocation24_spill] sm:$0xff] }
  0xbf   : > { %3725 = vmatpush.msk.msra.mxu2 %vm1848_vm11, %v4350_v21  ;;  %3513 = vmatpush.msk.msrb.mxu0 %vm1182_vm12, %v4350_v21  ;;  %vm1780_vm11 = vcmp.eq.s32.totalorder %v4537_v15, %v5598_v59  ;;  %vm1812_vm12 = vcmp.eq.s32.totalorder %v4540_v16, %v5598_v59 }
  0xc0   : > { %3529 = vmatpush.msk.msrb.mxu1 %vm1214_vm13, %v4350_v21  ;;  %3562 = vmatpush.msk.msrb.mxu3 %vm1276_vm14, %v4350_v21  ;;  %vm1840_vm13 = vcmp.eq.s32.totalorder %v4543_v17, %v5598_v59  ;;  %vm1874_vm14 = vcmp.eq.s32.totalorder %v4546_v18, %v5598_v59 }
  0xc1   : > { %1730 = vmatmul.f32.vlgmr.msrb.gmra.mxu3 %v5390_v13  ;;  %3726 = vmatpush.msk.msra.mxu2 %vm1846_vm15, %v4350_v21  ;;  %vm1778_vm15 = vcmp.eq.s32.totalorder %v4549_v19, %v5598_v59  ;;  %v6599_v13 = vld [vmem:[#allocation26_spill] sm:$0xff] }
  0xc2   : > { %3741 = vmatpush.msk.msra.mxu3 %vm1880_vm0, %v4350_v21  ;;  %3514 = vmatpush.msk.msrb.mxu0 %vm1180_vm1, %v4350_v21  ;;  %vm1810_vm0 = vcmp.eq.s32.totalorder %v4552_v20, %v5598_v59  ;;  %vm1838_vm1 = vcmp.eq.s32.totalorder %v4569_v22, %v5598_v59 }
  0xc3   : > { %3530 = vmatpush.msk.msrb.mxu1 %vm1212_vm2, %v4350_v21  ;;  %1670 = vmatmul.f32.vlgmr.msrb.gmra.mxu0 %v5411_v56  ;;  %vm1872_vm2 = vcmp.eq.s32.totalorder %v4572_v23, %v5598_v59  ;;  %v6598_v56 = vld [vmem:[#allocation21_spill] sm:$0xff] }
  0xc4   : > { %1690 = vmatmul.f32.vlgmr.msrb.gmra.mxu1 %v5413_v58  ;;  %3693 = vmatpush.msk.msra.mxu0 %vm1784_vm3, %v4350_v21  ;;  %vm1776_vm3 = vcmp.eq.s32.totalorder %v4583_v24, %v5598_v59  ;;  %v6601_v58 = vld [vmem:[#allocation25_spill] sm:$0xff] }
  0xc5   : > { %3709 = vmatpush.msk.msra.mxu1 %vm1816_vm4, %v4350_v21  ;;  %3727 = vmatpush.msk.msra.mxu2 %vm1844_vm5, %v4350_v21  ;;  %vm1808_vm4 = vcmp.eq.s32.totalorder %v4597_v25, %v5598_v59  ;;  %vm1836_vm5 = vcmp.eq.s32.totalorder %v4630_v29, %v5598_v59 }
  0xc6   : > { %3742 = vmatpush.msk.msra.mxu3 %vm1878_vm6, %v4350_v21  ;;  %3694 = vmatpush.msk.msra.mxu0 %vm1782_vm7, %v4350_v21  ;;  %vm1870_vm6 = vcmp.eq.s32.totalorder %v4606_v26, %v5598_v59  ;;  %vm1774_vm7 = vcmp.eq.s32.totalorder %v4609_v27, %v5598_v59 }
  0xc7   : > { %3710 = vmatpush.msk.msra.mxu1 %vm1814_vm8, %v4350_v21  ;;  %3728 = vmatpush.msk.msra.mxu2 %vm1842_vm9, %v4350_v21  ;;  %vm1806_vm8 = vcmp.eq.s32.totalorder %v4621_v28, %v5598_v59  ;;  %vm1834_vm9 = vcmp.eq.s32.totalorder %v4656_v33, %v5598_v59 }
  0xc8   : > { %3743 = vmatpush.msk.msra.mxu3 %vm1876_vm10, %v4350_v21  ;;  %3695 = vmatpush.msk.msra.mxu0 %vm1780_vm11, %v4350_v21  ;;  %vm1868_vm10 = vcmp.eq.s32.totalorder %v4633_v30, %v5598_v59  ;;  %vm1772_vm11 = vcmp.eq.s32.totalorder %v4642_v31, %v5598_v59 }
  0xc9   : > { %3711 = vmatpush.msk.msra.mxu1 %vm1812_vm12, %v4350_v21  ;;  %3729 = vmatpush.msk.msra.mxu2 %vm1840_vm13, %v4350_v21  ;;  %vm1804_vm12 = vcmp.eq.s32.totalorder %v4645_v32, %v5598_v59  ;;  %vm1832_vm13 = vcmp.eq.s32.totalorder %v4690_v37, %v5598_v59 }
  0xca   : > { %3744 = vmatpush.msk.msra.mxu3 %vm1874_vm14, %v4350_v21  ;;  %3696 = vmatpush.msk.msra.mxu0 %vm1778_vm15, %v4350_v21  ;;  %vm1866_vm14 = vcmp.eq.s32.totalorder %v4669_v34, %v5598_v59  ;;  %vm1770_vm15 = vcmp.eq.s32.totalorder %v4672_v35, %v5598_v59 }
  0xcb   : > { %3712 = vmatpush.msk.msra.mxu1 %vm1810_vm0, %v4350_v21  ;;  %3730 = vmatpush.msk.msra.mxu2 %vm1838_vm1, %v4350_v21  ;;  %vm1802_vm0 = vcmp.eq.s32.totalorder %v4675_v36, %v5598_v59  ;;  %vm1830_vm1 = vcmp.eq.s32.totalorder %v4728_v41, %v5598_v59 }
  0xcc   : > { %3745 = vmatpush.msk.msra.mxu3 %vm1872_vm2, %v4350_v21  ;;  %3697 = vmatpush.msk.msra.mxu0 %vm1776_vm3, %v4350_v21  ;;  %vm1864_vm2 = vcmp.eq.s32.totalorder %v4693_v38, %v5598_v59  ;;  %vm1768_vm3 = vcmp.eq.s32.totalorder %v4708_v39, %v5598_v59 }
  0xcd   : > { %3713 = vmatpush.msk.msra.mxu1 %vm1808_vm4, %v4350_v21  ;;  %3731 = vmatpush.msk.msra.mxu2 %vm1836_vm5, %v4350_v21  ;;  %vm1800_vm4 = vcmp.eq.s32.totalorder %v4711_v40, %v5598_v59  ;;  %vm1828_vm5 = vcmp.eq.s32.totalorder %v4762_v45, %v5598_v59 }
  0xce   : > { %3746 = vmatpush.msk.msra.mxu3 %vm1870_vm6, %v4350_v21  ;;  %3698 = vmatpush.msk.msra.mxu0 %vm1774_vm7, %v4350_v21  ;;  %vm1862_vm6 = vcmp.eq.s32.totalorder %v4741_v42, %v5598_v59  ;;  %vm1766_vm7 = vcmp.eq.s32.totalorder %v4744_v43, %v5598_v59 }
  0xcf   : > { %3714 = vmatpush.msk.msra.mxu1 %vm1806_vm8, %v4350_v21  ;;  %3732 = vmatpush.msk.msra.mxu2 %vm1834_vm9, %v4350_v21  ;;  %vm1798_vm8 = vcmp.eq.s32.totalorder %v4747_v44, %v5598_v59  ;;  %vm1826_vm9 = vcmp.eq.s32.totalorder %v4802_v50, %v5598_v59 }
  0xd0   : > { %3747 = vmatpush.msk.msra.mxu3 %vm1868_vm10, %v4350_v21  ;;  %3699 = vmatpush.msk.msra.mxu0 %vm1772_vm11, %v4350_v21  ;;  %vm1860_vm10 = vcmp.eq.s32.totalorder %v6579_v46, %v5598_v59  ;;  %vm1764_vm11 = vcmp.eq.s32.totalorder %v6597_v48, %v5598_v59 }
  0xd1   : > { %3715 = vmatpush.msk.msra.mxu1 %vm1804_vm12, %v4350_v21  ;;  %3733 = vmatpush.msk.msra.mxu2 %vm1832_vm13, %v4350_v21  ;;  %vm1796_vm12 = vcmp.eq.s32.totalorder %v6598_v56, %v5598_v59  ;;  %vm1824_vm13 = vcmp.eq.s32.totalorder %v6599_v13, %v5598_v59  ;;  %v6602_v56 = vld [vmem:[#allocation30_spill] sm:$0xff]  ;;  %v5801_v13 = vld.sshfl [vmem:[#allocation1 + $0x18] sm:$0xff pattern:$0x75316420] }
  0xd2   : > { %3748 = vmatpush.msk.msra.mxu3 %vm1866_vm14, %v4350_v21  ;;  %3700 = vmatpush.msk.msra.mxu0 %vm1770_vm15, %v4350_v21  ;;  %vm1858_vm14 = vcmp.eq.s32.totalorder %v6583_v55, %v5598_v59  ;;  %vm1762_vm15 = vcmp.eq.s32.totalorder %v6600_v53, %v5598_v59  ;;  %v6603_v55 = vld [vmem:[#allocation28_spill] sm:$0xff]  ;;  %v5791_v53 = vperm.slane %v5581_v54, 1  ;;  %v6605_v54 = vld [vmem:[#allocation19_spill] sm:$0xff] }
  0xd3   : > { %3716 = vmatpush.msk.msra.mxu1 %vm1802_vm0, %v4350_v21  ;;  %3734 = vmatpush.msk.msra.mxu2 %vm1830_vm1, %v4350_v21  ;;  %vm1794_vm0 = vcmp.eq.s32.totalorder %v6601_v58, %v5598_v59  ;;  %vm1822_vm1 = vcmp.eq.s32.totalorder %v6602_v56, %v5598_v59  ;;  %v6604_v56 = vld [vmem:[#allocation32_spill] sm:$0xff]  ;;  %v5799_v58 = vld.sshfl [vmem:[#allocation1 + $0x10] sm:$0xff pattern:$0x75316420] }
  0xd4   : > { %3749 = vmatpush.msk.msra.mxu3 %vm1864_vm2, %v4350_v21  ;;  %3701 = vmatpush.msk.msra.mxu0 %vm1768_vm3, %v4350_v21  ;;  %vm1856_vm2 = vcmp.eq.s32.totalorder %v6576_v47, %v5598_v59  ;;  %vm1760_vm3 = vcmp.eq.s32.totalorder %v6603_v55, %v5598_v59  ;;  %2715 = vst [vmem:[#allocation1 + $0x10] ss:$2 sm:$0xff] %v6605_v54  ;;  %v5822_v54 = vld.sshfl [vmem:[#allocation1] sm:$0xff pattern:$0x75316420] }
  0xd5   : > { %3717 = vmatpush.msk.msra.mxu1 %vm1800_vm4, %v4350_v21  ;;  %3735 = vmatpush.msk.msra.mxu2 %vm1828_vm5, %v4350_v21  ;;  %vm1792_vm4 = vcmp.eq.s32.totalorder %v4858_v57, %v5598_v59  ;;  %vm1820_vm5 = vcmp.eq.s32.totalorder %v6604_v56, %v5598_v59 }
  0xd6   : > { %3750 = vmatpush.msk.msra.mxu3 %vm1862_vm6, %v4350_v21  ;;  %3702 = vmatpush.msk.msra.mxu0 %vm1766_vm7, %v4350_v21  ;;  %vm1854_vm6 = vcmp.eq.s32.totalorder %v4890_v60, %v5598_v59  ;;  %vm1758_vm7 = vcmp.eq.s32.totalorder %v6595_v63, %v5598_v59  ;;  %v5824_v63 = vld.sshfl [vmem:[#allocation1 + $0x8] sm:$0xff pattern:$0x75316420] }
  0xd7   : > { %3718 = vmatpush.msk.msra.mxu1 %vm1798_vm8, %v4350_v21  ;;  %3736 = vmatpush.msk.msra.mxu2 %vm1826_vm9, %v4350_v21  ;;  %vm1790_vm8 = vcmp.eq.s32.totalorder %v4896_v62, %v5598_v59  ;;  %vm1818_vm9 = vcmp.eq.s32.totalorder %v6596_v49, %v5598_v59  ;;  %v6606_v49 = vld [vmem:[#allocation29_spill] sm:$0xff] }
  0xd8   : > { %3751 = vmatpush.msk.msra.mxu3 %vm1860_vm10, %v4350_v21  ;;  %3703 = vmatpush.msk.msra.mxu0 %vm1764_vm11, %v4350_v21  ;;  %vm1852_vm10 = vcmp.eq.s32.totalorder %v4915_v0, %v5598_v59  ;;  %vm1849_vm11 = vcmp.eq.s32.totalorder %v4498_v2, %v5791_v53  ;;  %2713 = vst [vmem:[#allocation1] ss:$2 sm:$0xff] %v6606_v49  ;;  %v6607_v49 = vld [vmem:[#allocation21_spill] sm:$0xff] }
  0xd9   : > { %3719 = vmatpush.msk.msra.mxu1 %vm1796_vm12, %v4350_v21  ;;  %3737 = vmatpush.msk.msra.mxu2 %vm1824_vm13, %v4350_v21  ;;  %vm1756_vm12 = vcmp.eq.s32.totalorder %v6577_v61, %v5598_v59  ;;  %vm1788_vm13 = vcmp.eq.s32.totalorder %v6578_v51, %v5598_v59 }
  0xda   : > { %3752 = vmatpush.msk.msra.mxu3 %vm1858_vm14, %v4350_v21  ;;  %3704 = vmatpush.msk.msra.mxu0 %vm1762_vm15, %v4350_v21  ;;  %vm1850_vm14 = vcmp.eq.s32.totalorder %v4960_v52, %v5598_v59  ;;  %vm1847_vm15 = vcmp.eq.s32.totalorder %v4501_v3, %v5791_v53 }
  0xdb   : > { %3720 = vmatpush.msk.msra.mxu1 %vm1794_vm0, %v4350_v21  ;;  %3738 = vmatpush.msk.msra.mxu2 %vm1822_vm1, %v4350_v21  ;;  %vm1881_vm0 = vcmp.eq.s32.totalorder %v4504_v4, %v5791_v53  ;;  %vm1754_vm1 = vcmp.eq.s32.totalorder %v4495_v1, %v5598_v59 }
  0xdc   : > { %3753 = vmatpush.msk.msra.mxu3 %vm1856_vm2, %v4350_v21  ;;  %3705 = vmatpush.msk.msra.mxu0 %vm1760_vm3, %v4350_v21  ;;  %vm1786_vm2 = vcmp.eq.s32.totalorder %v4977_v9, %v5598_v59  ;;  %vm1785_vm3 = vcmp.eq.s32.totalorder %v4507_v5, %v5791_v53  ;;  %v6608_v59 = vld [vmem:[#allocation26_spill] sm:$0xff] }
  0xdd   : > { %3721 = vmatpush.msk.msra.mxu1 %vm1792_vm4, %v4350_v21  ;;  %3739 = vmatpush.msk.msra.mxu2 %vm1820_vm5, %v4350_v21  ;;  %vm1817_vm4 = vcmp.eq.s32.totalorder %v4510_v6, %v5791_v53  ;;  %vm1845_vm5 = vcmp.eq.s32.totalorder %v4513_v7, %v5791_v53 }
  0xde   : > { %3754 = vmatpush.msk.msra.mxu3 %vm1854_vm6, %v4350_v21  ;;  %3706 = vmatpush.msk.msra.mxu0 %vm1758_vm7, %v4350_v21  ;;  %vm1879_vm6 = vcmp.eq.s32.totalorder %v4516_v8, %v5791_v53  ;;  %vm1783_vm7 = vcmp.eq.s32.totalorder %v4522_v10, %v5791_v53 }
  0xdf   : > { %3722 = vmatpush.msk.msra.mxu1 %vm1790_vm8, %v4350_v21  ;;  %3740 = vmatpush.msk.msra.mxu2 %vm1818_vm9, %v4350_v21  ;;  %vm1815_vm8 = vcmp.eq.s32.totalorder %v4525_v11, %v5791_v53  ;;  %vm1843_vm9 = vcmp.eq.s32.totalorder %v4528_v12, %v5791_v53 }
  0xe0   : > { %3755 = vmatpush.msk.msra.mxu3 %vm1852_vm10, %v4350_v21  ;;  %3707 = vmatpush.msk.msra.mxu0 %vm1756_vm12, %v4350_v21  ;;  %vm1877_vm10 = vcmp.eq.s32.totalorder %v4534_v14, %v5791_v53  ;;  %vm1813_vm12 = vcmp.eq.s32.totalorder %v4540_v16, %v5791_v53 }
  0xe1   : > { %3789 = vmatpush.msk.msrb.mxu2 %vm1849_vm11, %v4350_v21  ;;  %3723 = vmatpush.msk.msra.mxu1 %vm1788_vm13, %v4350_v21  ;;  %vm1781_vm11 = vcmp.eq.s32.totalorder %v4537_v15, %v5791_v53  ;;  %vm1841_vm13 = vcmp.eq.s32.totalorder %v4543_v17, %v5791_v53 }
  0xe2   : > { %3756 = vmatpush.msk.msra.mxu3 %vm1850_vm14, %v4350_v21  ;;  %3708 = vmatpush.msk.msra.mxu0 %vm1754_vm1, %v4350_v21  ;;  %vm1875_vm14 = vcmp.eq.s32.totalorder %v4546_v18, %v5791_v53  ;;  %vm1839_vm1 = vcmp.eq.s32.totalorder %v4569_v22, %v5791_v53 }
  0xe3   : > { %3790 = vmatpush.msk.msrb.mxu2 %vm1847_vm15, %v4350_v21  ;;  %3724 = vmatpush.msk.msra.mxu1 %vm1786_vm2, %v4350_v21  ;;  %vm1779_vm15 = vcmp.eq.s32.totalorder %v4549_v19, %v5791_v53  ;;  %vm1873_vm2 = vcmp.eq.s32.totalorder %v4572_v23, %v5791_v53 }
  0xe4   : > { %3805 = vmatpush.msk.msrb.mxu3 %vm1881_vm0, %v4350_v21  ;;  %3757 = vmatpush.msk.msrb.mxu0 %vm1785_vm3, %v4350_v21  ;;  %vm1811_vm0 = vcmp.eq.s32.totalorder %v4552_v20, %v5791_v53  ;;  %vm1777_vm3 = vcmp.eq.s32.totalorder %v4583_v24, %v5791_v53 }
  0xe5   : > { %3773 = vmatpush.msk.msrb.mxu1 %vm1817_vm4, %v4350_v21  ;;  %3791 = vmatpush.msk.msrb.mxu2 %vm1845_vm5, %v4350_v21  ;;  %vm1809_vm4 = vcmp.eq.s32.totalorder %v4597_v25, %v5791_v53  ;;  %vm1837_vm5 = vcmp.eq.s32.totalorder %v4630_v29, %v5791_v53 }
  0xe6   : > { %3806 = vmatpush.msk.msrb.mxu3 %vm1879_vm6, %v4350_v21  ;;  %3758 = vmatpush.msk.msrb.mxu0 %vm1783_vm7, %v4350_v21  ;;  %vm1871_vm6 = vcmp.eq.s32.totalorder %v4606_v26, %v5791_v53  ;;  %vm1775_vm7 = vcmp.eq.s32.totalorder %v4609_v27, %v5791_v53 }
  0xe7   : > { %3774 = vmatpush.msk.msrb.mxu1 %vm1815_vm8, %v4350_v21  ;;  %3792 = vmatpush.msk.msrb.mxu2 %vm1843_vm9, %v4350_v21  ;;  %vm1807_vm8 = vcmp.eq.s32.totalorder %v4621_v28, %v5791_v53  ;;  %vm1835_vm9 = vcmp.eq.s32.totalorder %v4656_v33, %v5791_v53 }
  0xe8   : > { %3807 = vmatpush.msk.msrb.mxu3 %vm1877_vm10, %v4350_v21  ;;  %3759 = vmatpush.msk.msrb.mxu0 %vm1781_vm11, %v4350_v21  ;;  %vm1869_vm10 = vcmp.eq.s32.totalorder %v4633_v30, %v5791_v53  ;;  %vm1773_vm11 = vcmp.eq.s32.totalorder %v4642_v31, %v5791_v53 }
  0xe9   : > { %3775 = vmatpush.msk.msrb.mxu1 %vm1813_vm12, %v4350_v21  ;;  %3793 = vmatpush.msk.msrb.mxu2 %vm1841_vm13, %v4350_v21  ;;  %vm1805_vm12 = vcmp.eq.s32.totalorder %v4645_v32, %v5791_v53  ;;  %vm1833_vm13 = vcmp.eq.s32.totalorder %v4690_v37, %v5791_v53 }
  0xea   : > { %3808 = vmatpush.msk.msrb.mxu3 %vm1875_vm14, %v4350_v21  ;;  %3760 = vmatpush.msk.msrb.mxu0 %vm1779_vm15, %v4350_v21  ;;  %vm1867_vm14 = vcmp.eq.s32.totalorder %v4669_v34, %v5791_v53  ;;  %vm1771_vm15 = vcmp.eq.s32.totalorder %v4672_v35, %v5791_v53 }
  0xeb   : > { %3776 = vmatpush.msk.msrb.mxu1 %vm1811_vm0, %v4350_v21  ;;  %3794 = vmatpush.msk.msrb.mxu2 %vm1839_vm1, %v4350_v21  ;;  %vm1803_vm0 = vcmp.eq.s32.totalorder %v4675_v36, %v5791_v53  ;;  %vm1831_vm1 = vcmp.eq.s32.totalorder %v4728_v41, %v5791_v53 }
  0xec   : > { %3809 = vmatpush.msk.msrb.mxu3 %vm1873_vm2, %v4350_v21  ;;  %3761 = vmatpush.msk.msrb.mxu0 %vm1777_vm3, %v4350_v21  ;;  %vm1865_vm2 = vcmp.eq.s32.totalorder %v4693_v38, %v5791_v53  ;;  %vm1769_vm3 = vcmp.eq.s32.totalorder %v4708_v39, %v5791_v53 }
  0xed   : > { %3777 = vmatpush.msk.msrb.mxu1 %vm1809_vm4, %v4350_v21  ;;  %3795 = vmatpush.msk.msrb.mxu2 %vm1837_vm5, %v4350_v21  ;;  %vm1801_vm4 = vcmp.eq.s32.totalorder %v4711_v40, %v5791_v53  ;;  %vm1829_vm5 = vcmp.eq.s32.totalorder %v4762_v45, %v5791_v53 }
  0xee   : > { %3810 = vmatpush.msk.msrb.mxu3 %vm1871_vm6, %v4350_v21  ;;  %3762 = vmatpush.msk.msrb.mxu0 %vm1775_vm7, %v4350_v21  ;;  %vm1863_vm6 = vcmp.eq.s32.totalorder %v4741_v42, %v5791_v53  ;;  %vm1767_vm7 = vcmp.eq.s32.totalorder %v4744_v43, %v5791_v53 }
  0xef   : > { %3778 = vmatpush.msk.msrb.mxu1 %vm1807_vm8, %v4350_v21  ;;  %3796 = vmatpush.msk.msrb.mxu2 %vm1835_vm9, %v4350_v21  ;;  %vm1799_vm8 = vcmp.eq.s32.totalorder %v4747_v44, %v5791_v53  ;;  %vm1827_vm9 = vcmp.eq.s32.totalorder %v4802_v50, %v5791_v53  ;;  %v6610_v50 = vld [vmem:[#allocation24_spill] sm:$0xff] }
  0xf0   : > { %3811 = vmatpush.msk.msrb.mxu3 %vm1869_vm10, %v4350_v21  ;;  %3763 = vmatpush.msk.msrb.mxu0 %vm1773_vm11, %v4350_v21  ;;  %vm1861_vm10 = vcmp.eq.s32.totalorder %v6579_v46, %v5791_v53  ;;  %vm1765_vm11 = vcmp.eq.s32.totalorder %v6597_v48, %v5791_v53  ;;  %v6609_v46 = vld [vmem:[#allocation23_spill] sm:$0xff]  ;;  %v6612_v48 = vld [vmem:[#allocation30_spill] sm:$0xff] }
  0xf1   : > { %3779 = vmatpush.msk.msrb.mxu1 %vm1805_vm12, %v4350_v21  ;;  %3797 = vmatpush.msk.msrb.mxu2 %vm1833_vm13, %v4350_v21  ;;  %vm1797_vm12 = vcmp.eq.s32.totalorder %v6607_v49, %v5791_v53  ;;  %vm1825_vm13 = vcmp.eq.s32.totalorder %v6608_v59, %v5791_v53  ;;  %v6611_v49 = vld [vmem:[#allocation25_spill] sm:$0xff]  ;;  %v5992_v59 = vld [vmem:[%s4477_s6 + $0x3] ss:$4 sm:$0x3] }
  0xf2   : > { %3812 = vmatpush.msk.msrb.mxu3 %vm1867_vm14, %v4350_v21  ;;  %3764 = vmatpush.msk.msrb.mxu0 %vm1771_vm15, %v4350_v21  ;;  %vm1859_vm14 = vcmp.eq.s32.totalorder %v6609_v46, %v5791_v53  ;;  %vm1763_vm15 = vcmp.eq.s32.totalorder %v6610_v50, %v5791_v53 }
  0xf3   : > { %3780 = vmatpush.msk.msrb.mxu1 %vm1803_vm0, %v4350_v21  ;;  %3798 = vmatpush.msk.msrb.mxu2 %vm1831_vm1, %v4350_v21  ;;  %vm1795_vm0 = vcmp.eq.s32.totalorder %v6611_v49, %v5791_v53  ;;  %vm1823_vm1 = vcmp.eq.s32.totalorder %v6612_v48, %v5791_v53  ;;  %v6009_v48 = vperm.slane %v5992_v59, 0 }
  0xf4   : > { %3813 = vmatpush.msk.msrb.mxu3 %vm1865_vm2, %v4350_v21  ;;  %3765 = vmatpush.msk.msrb.mxu0 %vm1769_vm3, %v4350_v21  ;;  %vm1857_vm2 = vcmp.eq.s32.totalorder %v6576_v47, %v5791_v53  ;;  %vm1761_vm3 = vcmp.eq.s32.totalorder %v6603_v55, %v5791_v53  ;;  %v6613_v55 = vld [vmem:[#allocation31_spill] sm:$0xff] }
  0xf5   : > { %3781 = vmatpush.msk.msrb.mxu1 %vm1801_vm4, %v4350_v21  ;;  %3799 = vmatpush.msk.msrb.mxu2 %vm1829_vm5, %v4350_v21  ;;  %vm1793_vm4 = vcmp.eq.s32.totalorder %v4858_v57, %v5791_v53  ;;  %vm1821_vm5 = vcmp.eq.s32.totalorder %v6604_v56, %v5791_v53  ;;  %v6614_v56 = vld [vmem:[#allocation34_spill] sm:$0xff] }
  0xf6   : > { %3814 = vmatpush.msk.msrb.mxu3 %vm1863_vm6, %v4350_v21  ;;  %3766 = vmatpush.msk.msrb.mxu0 %vm1767_vm7, %v4350_v21  ;;  %vm1855_vm6 = vcmp.eq.s32.totalorder %v4890_v60, %v5791_v53  ;;  %vm1759_vm7 = vcmp.eq.s32.totalorder %v6613_v55, %v5791_v53 }
  0xf7   : > { %3782 = vmatpush.msk.msrb.mxu1 %vm1799_vm8, %v4350_v21  ;;  %3800 = vmatpush.msk.msrb.mxu2 %vm1827_vm9, %v4350_v21  ;;  %vm1791_vm8 = vcmp.eq.s32.totalorder %v4896_v62, %v5791_v53  ;;  %vm1819_vm9 = vcmp.eq.s32.totalorder %v6614_v56, %v5791_v53 }
  0xf8   : > { %3815 = vmatpush.msk.msrb.mxu3 %vm1861_vm10, %v4350_v21  ;;  %2205 = vmatmul.f32.vlgmr.msra.gmra.mxu2 %v5799_v58  ;;  %vm1853_vm10 = vcmp.eq.s32.totalorder %v4915_v0, %v5791_v53 }
  0xf9   : > { %3767 = vmatpush.msk.msrb.mxu0 %vm1765_vm11, %v4350_v21  ;;  %3783 = vmatpush.msk.msrb.mxu1 %vm1797_vm12, %v4350_v21  ;;  %vm2423_vm11 = vcmp.eq.s32.totalorder %v4498_v2, %v6009_v48  ;;  %vm1757_vm12 = vcmp.eq.s32.totalorder %v6577_v61, %v5791_v53 }
  0xfa   : > { %3801 = vmatpush.msk.msrb.mxu2 %vm1825_vm13, %v4350_v21  ;;  %3816 = vmatpush.msk.msrb.mxu3 %vm1859_vm14, %v4350_v21  ;;  %vm1789_vm13 = vcmp.eq.s32.totalorder %v6578_v51, %v5791_v53  ;;  %vm1851_vm14 = vcmp.eq.s32.totalorder %v4960_v52, %v5791_v53 }
  0xfb   : > { %2225 = vmatmul.f32.vlgmr.msra.gmra.mxu3 %v5801_v13  ;;  %3768 = vmatpush.msk.msrb.mxu0 %vm1763_vm15, %v4350_v21  ;;  %vm2421_vm15 = vcmp.eq.s32.totalorder %v4501_v3, %v6009_v48 }
  0xfc   : > { %3784 = vmatpush.msk.msrb.mxu1 %vm1795_vm0, %v4350_v21  ;;  %3802 = vmatpush.msk.msrb.mxu2 %vm1823_vm1, %v4350_v21  ;;  %vm2455_vm0 = vcmp.eq.s32.totalorder %v4504_v4, %v6009_v48  ;;  %vm1755_vm1 = vcmp.eq.s32.totalorder %v4495_v1, %v5791_v53 }
  0xfd   : > { %3817 = vmatpush.msk.msrb.mxu3 %vm1857_vm2, %v4350_v21  ;;  %2165 = vmatmul.f32.vlgmr.msra.gmra.mxu0 %v5822_v54  ;;  %vm1787_vm2 = vcmp.eq.s32.totalorder %v4977_v9, %v5791_v53  ;;  %v6617_v53 = vld [vmem:[#allocation20_spill] sm:$0xff] }
  0xfe   : > { %2185 = vmatmul.f32.vlgmr.msra.gmra.mxu1 %v5824_v63  ;;  %3769 = vmatpush.msk.msrb.mxu0 %vm1761_vm3, %v4350_v21  ;;  %vm2359_vm3 = vcmp.eq.s32.totalorder %v4507_v5, %v6009_v48 }
  0xff   : > { %3785 = vmatpush.msk.msrb.mxu1 %vm1793_vm4, %v4350_v21  ;;  %3803 = vmatpush.msk.msrb.mxu2 %vm1821_vm5, %v4350_v21  ;;  %vm2391_vm4 = vcmp.eq.s32.totalorder %v4510_v6, %v6009_v48  ;;  %vm2419_vm5 = vcmp.eq.s32.totalorder %v4513_v7, %v6009_v48 }
 0x100   : > { %3818 = vmatpush.msk.msrb.mxu3 %vm1855_vm6, %v4350_v21  ;;  %3770 = vmatpush.msk.msrb.mxu0 %vm1759_vm7, %v4350_v21  ;;  %vm2453_vm6 = vcmp.eq.s32.totalorder %v4516_v8, %v6009_v48  ;;  %vm2357_vm7 = vcmp.eq.s32.totalorder %v4522_v10, %v6009_v48 }
 0x101   : > { %3786 = vmatpush.msk.msrb.mxu1 %vm1791_vm8, %v4350_v21  ;;  %3804 = vmatpush.msk.msrb.mxu2 %vm1819_vm9, %v4350_v21  ;;  %vm2389_vm8 = vcmp.eq.s32.totalorder %v4525_v11, %v6009_v48  ;;  %vm2417_vm9 = vcmp.eq.s32.totalorder %v4528_v12, %v6009_v48 }
 0x102   : > { %3819 = vmatpush.msk.msrb.mxu3 %vm1853_vm10, %v4350_v21  ;;  %2285 = vmatmul.f32.vlgmr.msrb.gmra.mxu2 %v5799_v58  ;;  %vm2451_vm10 = vcmp.eq.s32.totalorder %v4534_v14, %v6009_v48  ;;  %v6618_v58 = vld [vmem:[#allocation21_spill] sm:$0xff] }
 0x103   : > { %3983 = vmatpush.msk.msra.mxu2 %vm2423_vm11, %v4350_v21  ;;  %3771 = vmatpush.msk.msrb.mxu0 %vm1757_vm12, %v4350_v21  ;;  %vm2355_vm11 = vcmp.eq.s32.totalorder %v4537_v15, %v6009_v48  ;;  %vm2387_vm12 = vcmp.eq.s32.totalorder %v4540_v16, %v6009_v48 }
 0x104   : > { %3787 = vmatpush.msk.msrb.mxu1 %vm1789_vm13, %v4350_v21  ;;  %3820 = vmatpush.msk.msrb.mxu3 %vm1851_vm14, %v4350_v21  ;;  %vm2415_vm13 = vcmp.eq.s32.totalorder %v4543_v17, %v6009_v48  ;;  %vm2449_vm14 = vcmp.eq.s32.totalorder %v4546_v18, %v6009_v48 }
 0x105   : > { %2305 = vmatmul.f32.vlgmr.msrb.gmra.mxu3 %v5801_v13  ;;  %3984 = vmatpush.msk.msra.mxu2 %vm2421_vm15, %v4350_v21  ;;  %vm2353_vm15 = vcmp.eq.s32.totalorder %v4549_v19, %v6009_v48  ;;  %v6616_v13 = vld [vmem:[#allocation18_spill] sm:$0xff] }
 0x106   : > { %3999 = vmatpush.msk.msra.mxu3 %vm2455_vm0, %v4350_v21  ;;  %3772 = vmatpush.msk.msrb.mxu0 %vm1755_vm1, %v4350_v21  ;;  %vm2385_vm0 = vcmp.eq.s32.totalorder %v4552_v20, %v6009_v48  ;;  %vm2413_vm1 = vcmp.eq.s32.totalorder %v4569_v22, %v6009_v48 }
 0x107   : > { %3788 = vmatpush.msk.msrb.mxu1 %vm1787_vm2, %v4350_v21  ;;  %2245 = vmatmul.f32.vlgmr.msrb.gmra.mxu0 %v5822_v54  ;;  %vm2447_vm2 = vcmp.eq.s32.totalorder %v4572_v23, %v6009_v48  ;;  %v6619_v54 = vld [vmem:[#allocation26_spill] sm:$0xff] }
 0x108   : > { %2265 = vmatmul.f32.vlgmr.msrb.gmra.mxu1 %v5824_v63  ;;  %3951 = vmatpush.msk.msra.mxu0 %vm2359_vm3, %v4350_v21  ;;  %vm2351_vm3 = vcmp.eq.s32.totalorder %v4583_v24, %v6009_v48  ;;  %v6615_v63 = vld [vmem:[#allocation22_spill] sm:$0xff] }
 0x109   : > { %3967 = vmatpush.msk.msra.mxu1 %vm2391_vm4, %v4350_v21  ;;  %3985 = vmatpush.msk.msra.mxu2 %vm2419_vm5, %v4350_v21  ;;  %vm2383_vm4 = vcmp.eq.s32.totalorder %v4597_v25, %v6009_v48  ;;  %vm2411_vm5 = vcmp.eq.s32.totalorder %v4630_v29, %v6009_v48 }
 0x10a   : > { %4000 = vmatpush.msk.msra.mxu3 %vm2453_vm6, %v4350_v21  ;;  %3952 = vmatpush.msk.msra.mxu0 %vm2357_vm7, %v4350_v21  ;;  %vm2445_vm6 = vcmp.eq.s32.totalorder %v4606_v26, %v6009_v48  ;;  %vm2349_vm7 = vcmp.eq.s32.totalorder %v4609_v27, %v6009_v48 }
 0x10b   : > { %3968 = vmatpush.msk.msra.mxu1 %vm2389_vm8, %v4350_v21  ;;  %3986 = vmatpush.msk.msra.mxu2 %vm2417_vm9, %v4350_v21  ;;  %vm2381_vm8 = vcmp.eq.s32.totalorder %v4621_v28, %v6009_v48  ;;  %vm2409_vm9 = vcmp.eq.s32.totalorder %v4656_v33, %v6009_v48 }
 0x10c   : > { %4001 = vmatpush.msk.msra.mxu3 %vm2451_vm10, %v4350_v21  ;;  %3953 = vmatpush.msk.msra.mxu0 %vm2355_vm11, %v4350_v21  ;;  %vm2443_vm10 = vcmp.eq.s32.totalorder %v4633_v30, %v6009_v48  ;;  %vm2347_vm11 = vcmp.eq.s32.totalorder %v4642_v31, %v6009_v48 }
 0x10d   : > { %3969 = vmatpush.msk.msra.mxu1 %vm2387_vm12, %v4350_v21  ;;  %3987 = vmatpush.msk.msra.mxu2 %vm2415_vm13, %v4350_v21  ;;  %vm2379_vm12 = vcmp.eq.s32.totalorder %v4645_v32, %v6009_v48  ;;  %vm2407_vm13 = vcmp.eq.s32.totalorder %v4690_v37, %v6009_v48 }
 0x10e   : > { %4002 = vmatpush.msk.msra.mxu3 %vm2449_vm14, %v4350_v21  ;;  %3954 = vmatpush.msk.msra.mxu0 %vm2353_vm15, %v4350_v21  ;;  %vm2441_vm14 = vcmp.eq.s32.totalorder %v4669_v34, %v6009_v48  ;;  %vm2345_vm15 = vcmp.eq.s32.totalorder %v4672_v35, %v6009_v48 }
 0x10f   : > { %3970 = vmatpush.msk.msra.mxu1 %vm2385_vm0, %v4350_v21  ;;  %3988 = vmatpush.msk.msra.mxu2 %vm2413_vm1, %v4350_v21  ;;  %vm2377_vm0 = vcmp.eq.s32.totalorder %v4675_v36, %v6009_v48  ;;  %vm2405_vm1 = vcmp.eq.s32.totalorder %v4728_v41, %v6009_v48 }
 0x110   : > { %4003 = vmatpush.msk.msra.mxu3 %vm2447_vm2, %v4350_v21  ;;  %3955 = vmatpush.msk.msra.mxu0 %vm2351_vm3, %v4350_v21  ;;  %vm2439_vm2 = vcmp.eq.s32.totalorder %v4693_v38, %v6009_v48  ;;  %vm2343_vm3 = vcmp.eq.s32.totalorder %v4708_v39, %v6009_v48 }
 0x111   : > { %3971 = vmatpush.msk.msra.mxu1 %vm2383_vm4, %v4350_v21  ;;  %3989 = vmatpush.msk.msra.mxu2 %vm2411_vm5, %v4350_v21  ;;  %vm2375_vm4 = vcmp.eq.s32.totalorder %v4711_v40, %v6009_v48  ;;  %vm2403_vm5 = vcmp.eq.s32.totalorder %v4762_v45, %v6009_v48 }
 0x112   : > { %4004 = vmatpush.msk.msra.mxu3 %vm2445_vm6, %v4350_v21  ;;  %3956 = vmatpush.msk.msra.mxu0 %vm2349_vm7, %v4350_v21  ;;  %vm2437_vm6 = vcmp.eq.s32.totalorder %v4741_v42, %v6009_v48  ;;  %vm2341_vm7 = vcmp.eq.s32.totalorder %v4744_v43, %v6009_v48 }
 0x113   : > { %3972 = vmatpush.msk.msra.mxu1 %vm2381_vm8, %v4350_v21  ;;  %3990 = vmatpush.msk.msra.mxu2 %vm2409_vm9, %v4350_v21  ;;  %vm2373_vm8 = vcmp.eq.s32.totalorder %v4747_v44, %v6009_v48  ;;  %vm2401_vm9 = vcmp.eq.s32.totalorder %v6615_v63, %v6009_v48 }
 0x114   : > { %4005 = vmatpush.msk.msra.mxu3 %vm2443_vm10, %v4350_v21  ;;  %3957 = vmatpush.msk.msra.mxu0 %vm2347_vm11, %v4350_v21  ;;  %vm2435_vm10 = vcmp.eq.s32.totalorder %v6616_v13, %v6009_v48  ;;  %vm2339_vm11 = vcmp.eq.s32.totalorder %v6617_v53, %v6009_v48 }
 0x115   : > { %3973 = vmatpush.msk.msra.mxu1 %vm2379_vm12, %v4350_v21  ;;  %3991 = vmatpush.msk.msra.mxu2 %vm2407_vm13, %v4350_v21  ;;  %vm2371_vm12 = vcmp.eq.s32.totalorder %v6618_v58, %v6009_v48  ;;  %vm2399_vm13 = vcmp.eq.s32.totalorder %v6619_v54, %v6009_v48  ;;  %v6620_v58 = vld [vmem:[#allocation30_spill] sm:$0xff] }
 0x116   : > { %4006 = vmatpush.msk.msra.mxu3 %vm2441_vm14, %v4350_v21  ;;  %3958 = vmatpush.msk.msra.mxu0 %vm2345_vm15, %v4350_v21  ;;  %vm2433_vm14 = vcmp.eq.s32.totalorder %v6609_v46, %v6009_v48  ;;  %vm2337_vm15 = vcmp.eq.s32.totalorder %v6610_v50, %v6009_v48  ;;  %v6621_v46 = vld [vmem:[#allocation28_spill] sm:$0xff]  ;;  %v6202_v50 = vperm.slane %v5992_v59, 1 }
 0x117   : > { %3974 = vmatpush.msk.msra.mxu1 %vm2377_vm0, %v4350_v21  ;;  %3992 = vmatpush.msk.msra.mxu2 %vm2405_vm1, %v4350_v21  ;;  %vm2369_vm0 = vcmp.eq.s32.totalorder %v6611_v49, %v6009_v48  ;;  %vm2397_vm1 = vcmp.eq.s32.totalorder %v6620_v58, %v6009_v48  ;;  %v6622_v58 = vld [vmem:[#allocation32_spill] sm:$0xff] }
 0x118   : > { %4007 = vmatpush.msk.msra.mxu3 %vm2439_vm2, %v4350_v21  ;;  %3959 = vmatpush.msk.msra.mxu0 %vm2343_vm3, %v4350_v21  ;;  %vm2431_vm2 = vcmp.eq.s32.totalorder %v6576_v47, %v6009_v48  ;;  %vm2335_vm3 = vcmp.eq.s32.totalorder %v6621_v46, %v6009_v48 }
 0x119   : > { %3975 = vmatpush.msk.msra.mxu1 %vm2375_vm4, %v4350_v21  ;;  %3993 = vmatpush.msk.msra.mxu2 %vm2403_vm5, %v4350_v21  ;;  %vm2367_vm4 = vcmp.eq.s32.totalorder %v4858_v57, %v6009_v48  ;;  %vm2395_vm5 = vcmp.eq.s32.totalorder %v6622_v58, %v6009_v48 }
 0x11a   : > { %4008 = vmatpush.msk.msra.mxu3 %vm2437_vm6, %v4350_v21  ;;  %3960 = vmatpush.msk.msra.mxu0 %vm2341_vm7, %v4350_v21  ;;  %vm2429_vm6 = vcmp.eq.s32.totalorder %v4890_v60, %v6009_v48  ;;  %vm2333_vm7 = vcmp.eq.s32.totalorder %v6613_v55, %v6009_v48 }
 0x11b   : > { %3976 = vmatpush.msk.msra.mxu1 %vm2373_vm8, %v4350_v21  ;;  %3994 = vmatpush.msk.msra.mxu2 %vm2401_vm9, %v4350_v21  ;;  %vm2365_vm8 = vcmp.eq.s32.totalorder %v4896_v62, %v6009_v48  ;;  %vm2393_vm9 = vcmp.eq.s32.totalorder %v6614_v56, %v6009_v48 }
 0x11c   : > { %4009 = vmatpush.msk.msra.mxu3 %vm2435_vm10, %v4350_v21  ;;  %3961 = vmatpush.msk.msra.mxu0 %vm2339_vm11, %v4350_v21  ;;  %vm2427_vm10 = vcmp.eq.s32.totalorder %v4915_v0, %v6009_v48  ;;  %vm2424_vm11 = vcmp.eq.s32.totalorder %v4498_v2, %v6202_v50  ;;  %v2718_v2 = vld.sshfl [vmem:[#allocation1 + $0x10] sm:$0xff pattern:$0x75316420] }
 0x11d   : > { %3977 = vmatpush.msk.msra.mxu1 %vm2371_vm12, %v4350_v21  ;;  %3995 = vmatpush.msk.msra.mxu2 %vm2399_vm13, %v4350_v21  ;;  %vm2331_vm12 = vcmp.eq.s32.totalorder %v6577_v61, %v6009_v48  ;;  %vm2363_vm13 = vcmp.eq.s32.totalorder %v6578_v51, %v6009_v48 }
 0x11e   : > { %4010 = vmatpush.msk.msra.mxu3 %vm2433_vm14, %v4350_v21  ;;  %3962 = vmatpush.msk.msra.mxu0 %vm2337_vm15, %v4350_v21  ;;  %vm2425_vm14 = vcmp.eq.s32.totalorder %v4960_v52, %v6009_v48  ;;  %vm2422_vm15 = vcmp.eq.s32.totalorder %v4501_v3, %v6202_v50  ;;  %v6623_v3 = vld [vmem:[#allocation21_spill] sm:$0xff] }
 0x11f   : > { %3978 = vmatpush.msk.msra.mxu1 %vm2369_vm0, %v4350_v21  ;;  %3996 = vmatpush.msk.msra.mxu2 %vm2397_vm1, %v4350_v21  ;;  %vm2456_vm0 = vcmp.eq.s32.totalorder %v4504_v4, %v6202_v50  ;;  %vm2329_vm1 = vcmp.eq.s32.totalorder %v4495_v1, %v6009_v48  ;;  %v6624_v4 = vld [vmem:[#allocation23_spill] sm:$0xff] }
 0x120   : > { %4011 = vmatpush.msk.msra.mxu3 %vm2431_vm2, %v4350_v21  ;;  %3963 = vmatpush.msk.msra.mxu0 %vm2335_vm3, %v4350_v21  ;;  %vm2361_vm2 = vcmp.eq.s32.totalorder %v4977_v9, %v6009_v48  ;;  %vm2360_vm3 = vcmp.eq.s32.totalorder %v4507_v5, %v6202_v50  ;;  %v2719_v5 = vld.sshfl [vmem:[#allocation1 + $0x18] sm:$0xff pattern:$0x75316420] }
 0x121   : > { %3979 = vmatpush.msk.msra.mxu1 %vm2367_vm4, %v4350_v21  ;;  %3997 = vmatpush.msk.msra.mxu2 %vm2395_vm5, %v4350_v21  ;;  %vm2392_vm4 = vcmp.eq.s32.totalorder %v4510_v6, %v6202_v50  ;;  %vm2420_vm5 = vcmp.eq.s32.totalorder %v4513_v7, %v6202_v50  ;;  %v6625_v6 = vld [vmem:[#allocation24_spill] sm:$0xff]  ;;  %v6626_v7 = vld [vmem:[#allocation30_spill] sm:$0xff] }
 0x122   : > { %4012 = vmatpush.msk.msra.mxu3 %vm2429_vm6, %v4350_v21  ;;  %3964 = vmatpush.msk.msra.mxu0 %vm2333_vm7, %v4350_v21  ;;  %vm2454_vm6 = vcmp.eq.s32.totalorder %v4516_v8, %v6202_v50  ;;  %vm2358_vm7 = vcmp.eq.s32.totalorder %v4522_v10, %v6202_v50  ;;  %v2716_v8 = vld.sshfl [vmem:[#allocation1] sm:$0xff pattern:$0x75316420]  ;;  %v2717_v10 = vld.sshfl [vmem:[#allocation1 + $0x8] sm:$0xff pattern:$0x75316420] }
 0x123   : > { %3980 = vmatpush.msk.msra.mxu1 %vm2365_vm8, %v4350_v21  ;;  %3998 = vmatpush.msk.msra.mxu2 %vm2393_vm9, %v4350_v21  ;;  %vm2390_vm8 = vcmp.eq.s32.totalorder %v4525_v11, %v6202_v50  ;;  %vm2418_vm9 = vcmp.eq.s32.totalorder %v4528_v12, %v6202_v50  ;;  %v1016_v11 = vpop.f32.mrf.mxu0  ;;  %v1036_v12 = vpop.f32.mrf.mxu1 }
 0x124   : > { %4013 = vmatpush.msk.msra.mxu3 %vm2427_vm10, %v4350_v21  ;;  %3965 = vmatpush.msk.msra.mxu0 %vm2331_vm12, %v4350_v21  ;;  %vm2452_vm10 = vcmp.eq.s32.totalorder %v4534_v14, %v6202_v50  ;;  %vm2388_vm12 = vcmp.eq.s32.totalorder %v4540_v16, %v6202_v50  ;;  %v1056_v14 = vpop.f32.mrf.mxu2 }
 0x125   : > { %4047 = vmatpush.msk.msrb.mxu2 %vm2424_vm11, %v4350_v21  ;;  %3981 = vmatpush.msk.msra.mxu1 %vm2363_vm13, %v4350_v21  ;;  %vm2356_vm11 = vcmp.eq.s32.totalorder %v4537_v15, %v6202_v50  ;;  %vm2416_vm13 = vcmp.eq.s32.totalorder %v4543_v17, %v6202_v50 }
 0x126   : > { %4014 = vmatpush.msk.msra.mxu3 %vm2425_vm14, %v4350_v21  ;;  %3966 = vmatpush.msk.msra.mxu0 %vm2329_vm1, %v4350_v21  ;;  %vm2450_vm14 = vcmp.eq.s32.totalorder %v4546_v18, %v6202_v50  ;;  %vm2414_vm1 = vcmp.eq.s32.totalorder %v4569_v22, %v6202_v50 }
 0x127   : > { %4048 = vmatpush.msk.msrb.mxu2 %vm2422_vm15, %v4350_v21  ;;  %3982 = vmatpush.msk.msra.mxu1 %vm2361_vm2, %v4350_v21  ;;  %vm2354_vm15 = vcmp.eq.s32.totalorder %v4549_v19, %v6202_v50  ;;  %vm2448_vm2 = vcmp.eq.s32.totalorder %v4572_v23, %v6202_v50 }
 0x128   : > { %4063 = vmatpush.msk.msrb.mxu3 %vm2456_vm0, %v4350_v21  ;;  %4015 = vmatpush.msk.msrb.mxu0 %vm2360_vm3, %v4350_v21  ;;  %vm2386_vm0 = vcmp.eq.s32.totalorder %v4552_v20, %v6202_v50  ;;  %vm2352_vm3 = vcmp.eq.s32.totalorder %v4583_v24, %v6202_v50 }
 0x129   : > { %4031 = vmatpush.msk.msrb.mxu1 %vm2392_vm4, %v4350_v21  ;;  %4049 = vmatpush.msk.msrb.mxu2 %vm2420_vm5, %v4350_v21  ;;  %vm2384_vm4 = vcmp.eq.s32.totalorder %v4597_v25, %v6202_v50  ;;  %vm2412_vm5 = vcmp.eq.s32.totalorder %v4630_v29, %v6202_v50 }
 0x12a   : > { %4064 = vmatpush.msk.msrb.mxu3 %vm2454_vm6, %v4350_v21  ;;  %4016 = vmatpush.msk.msrb.mxu0 %vm2358_vm7, %v4350_v21  ;;  %vm2446_vm6 = vcmp.eq.s32.totalorder %v4606_v26, %v6202_v50  ;;  %vm2350_vm7 = vcmp.eq.s32.totalorder %v4609_v27, %v6202_v50 }
 0x12b   : > { %4032 = vmatpush.msk.msrb.mxu1 %vm2390_vm8, %v4350_v21  ;;  %4050 = vmatpush.msk.msrb.mxu2 %vm2418_vm9, %v4350_v21  ;;  %vm2382_vm8 = vcmp.eq.s32.totalorder %v4621_v28, %v6202_v50  ;;  %vm2410_vm9 = vcmp.eq.s32.totalorder %v4656_v33, %v6202_v50  ;;  %v1096_v15 = vpop.f32.mrf.mxu0  ;;  %v1116_v16 = vpop.f32.mrf.mxu1 }
 0x12c   : > { %4065 = vmatpush.msk.msrb.mxu3 %vm2452_vm10, %v4350_v21  ;;  %4017 = vmatpush.msk.msrb.mxu0 %vm2356_vm11, %v4350_v21  ;;  %vm2444_vm10 = vcmp.eq.s32.totalorder %v4633_v30, %v6202_v50  ;;  %vm2348_vm11 = vcmp.eq.s32.totalorder %v4642_v31, %v6202_v50  ;;  %v1136_v17 = vpop.f32.mrf.mxu2 }
 0x12d   : > { %4033 = vmatpush.msk.msrb.mxu1 %vm2388_vm12, %v4350_v21  ;;  %4051 = vmatpush.msk.msrb.mxu2 %vm2416_vm13, %v4350_v21  ;;  %vm2380_vm12 = vcmp.eq.s32.totalorder %v4645_v32, %v6202_v50  ;;  %vm2408_vm13 = vcmp.eq.s32.totalorder %v4690_v37, %v6202_v50 }
 0x12e   : > { %4066 = vmatpush.msk.msrb.mxu3 %vm2450_vm14, %v4350_v21  ;;  %4018 = vmatpush.msk.msrb.mxu0 %vm2354_vm15, %v4350_v21  ;;  %vm2442_vm14 = vcmp.eq.s32.totalorder %v4669_v34, %v6202_v50  ;;  %vm2346_vm15 = vcmp.eq.s32.totalorder %v4672_v35, %v6202_v50 }
 0x12f   : > { %4034 = vmatpush.msk.msrb.mxu1 %vm2386_vm0, %v4350_v21  ;;  %4052 = vmatpush.msk.msrb.mxu2 %vm2414_vm1, %v4350_v21  ;;  %vm2378_vm0 = vcmp.eq.s32.totalorder %v4675_v36, %v6202_v50  ;;  %vm2406_vm1 = vcmp.eq.s32.totalorder %v4728_v41, %v6202_v50  ;;  %v1117_v36 = vadd.f32 %v1116_v16, %v1096_v15 }
 0x130   : > { %4067 = vmatpush.msk.msrb.mxu3 %vm2448_vm2, %v4350_v21  ;;  %4019 = vmatpush.msk.msrb.mxu0 %vm2352_vm3, %v4350_v21  ;;  %vm2440_vm2 = vcmp.eq.s32.totalorder %v4693_v38, %v6202_v50  ;;  %vm2344_vm3 = vcmp.eq.s32.totalorder %v4708_v39, %v6202_v50  ;;  %v3563_v39 = vld [vmem:[%s4485_s25 + $0x1] ss:$4 sm:$0x3] }
 0x131   : > { %4035 = vmatpush.msk.msrb.mxu1 %vm2384_vm4, %v4350_v21  ;;  %4053 = vmatpush.msk.msrb.mxu2 %vm2412_vm5, %v4350_v21  ;;  %vm2376_vm4 = vcmp.eq.s32.totalorder %v4711_v40, %v6202_v50  ;;  %vm2404_vm5 = vcmp.eq.s32.totalorder %v4762_v45, %v6202_v50 }
 0x132   : > { %4068 = vmatpush.msk.msrb.mxu3 %vm2446_vm6, %v4350_v21  ;;  %4020 = vmatpush.msk.msrb.mxu0 %vm2350_vm7, %v4350_v21  ;;  %vm2438_vm6 = vcmp.eq.s32.totalorder %v4741_v42, %v6202_v50  ;;  %vm2342_vm7 = vcmp.eq.s32.totalorder %v4744_v43, %v6202_v50  ;;  %v1159_v42 = vld [vmem:[%s4485_s25] ss:$4 sm:$0x3]  ;;  %v1137_v43 = vadd.f32 %v1136_v17, %v1117_v36 }
 0x133   : > { %4036 = vmatpush.msk.msrb.mxu1 %vm2382_vm8, %v4350_v21  ;;  %4054 = vmatpush.msk.msrb.mxu2 %vm2410_vm9, %v4350_v21  ;;  %vm2374_vm8 = vcmp.eq.s32.totalorder %v4747_v44, %v6202_v50  ;;  %vm2402_vm9 = vcmp.eq.s32.totalorder %v6615_v63, %v6202_v50 }
 0x134   : > { %4069 = vmatpush.msk.msrb.mxu3 %vm2444_vm10, %v4350_v21  ;;  %4021 = vmatpush.msk.msrb.mxu0 %vm2348_vm11, %v4350_v21  ;;  %vm2436_vm10 = vcmp.eq.s32.totalorder %v6616_v13, %v6202_v50  ;;  %vm2340_vm11 = vcmp.eq.s32.totalorder %v6617_v53, %v6202_v50  ;;  %v1737_v13 = vperm.slane %v3563_v39, 0 }
 0x135   : > { %4037 = vmatpush.msk.msrb.mxu1 %vm2380_vm12, %v4350_v21  ;;  %4055 = vmatpush.msk.msrb.mxu2 %vm2408_vm13, %v4350_v21  ;;  %vm2372_vm12 = vcmp.eq.s32.totalorder %v6623_v3, %v6202_v50  ;;  %vm2400_vm13 = vcmp.eq.s32.totalorder %v6619_v54, %v6202_v50  ;;  %v1161_v3 = vperm.slane %v1159_v42, 0 }
 0x136   : > { %4070 = vmatpush.msk.msrb.mxu3 %vm2442_vm14, %v4350_v21  ;;  %4022 = vmatpush.msk.msrb.mxu0 %vm2346_vm15, %v4350_v21  ;;  %vm2434_vm14 = vcmp.eq.s32.totalorder %v6624_v4, %v6202_v50  ;;  %vm2338_vm15 = vcmp.eq.s32.totalorder %v6625_v6, %v6202_v50  ;;  %v1591_v19 = vpop.f32.mrf.mxu0 }
 0x137   : > { %4038 = vmatpush.msk.msrb.mxu1 %vm2378_vm0, %v4350_v21  ;;  %4056 = vmatpush.msk.msrb.mxu2 %vm2406_vm1, %v4350_v21  ;;  %vm2370_vm0 = vcmp.eq.s32.totalorder %v6611_v49, %v6202_v50  ;;  %vm2398_vm1 = vcmp.eq.s32.totalorder %v6626_v7, %v6202_v50  ;;  %v1611_v20 = vpop.f32.mrf.mxu1  ;;  %v1631_v22 = vpop.f32.mrf.mxu2 }
 0x138   : > { %4071 = vmatpush.msk.msrb.mxu3 %vm2440_vm2, %v4350_v21  ;;  %4023 = vmatpush.msk.msrb.mxu0 %vm2344_vm3, %v4350_v21  ;;  %vm2432_vm2 = vcmp.eq.s32.totalorder %v6576_v47, %v6202_v50  ;;  %vm2336_vm3 = vcmp.eq.s32.totalorder %v6621_v46, %v6202_v50  ;;  %v1612_v40 = vadd.f32 %v1611_v20, %v1591_v19 }
 0x139   : > { %4039 = vmatpush.msk.msrb.mxu1 %vm2376_vm4, %v4350_v21  ;;  %4057 = vmatpush.msk.msrb.mxu2 %vm2404_vm5, %v4350_v21  ;;  %vm2368_vm4 = vcmp.eq.s32.totalorder %v4858_v57, %v6202_v50  ;;  %vm2396_vm5 = vcmp.eq.s32.totalorder %v6622_v58, %v6202_v50  ;;  %v3821_v57 = vld [vmem:[%s4485_s25 + $0x2] ss:$4 sm:$0x3] }
 0x13a   : > { %4072 = vmatpush.msk.msrb.mxu3 %vm2438_vm6, %v4350_v21  ;;  %4024 = vmatpush.msk.msrb.mxu0 %vm2342_vm7, %v4350_v21  ;;  %vm2430_vm6 = vcmp.eq.s32.totalorder %v4890_v60, %v6202_v50  ;;  %vm2334_vm7 = vcmp.eq.s32.totalorder %v6613_v55, %v6202_v50  ;;  %v2313_v55 = vperm.slane %v3821_v57, 1  ;;  %v2312_v7 = vperm.slane %v3821_v57, 0 }
 0x13b   : > { %4040 = vmatpush.msk.msrb.mxu1 %vm2374_vm8, %v4350_v21  ;;  %4058 = vmatpush.msk.msrb.mxu2 %vm2402_vm9, %v4350_v21  ;;  %vm2366_vm8 = vcmp.eq.s32.totalorder %v4896_v62, %v6202_v50  ;;  %vm2394_vm9 = vcmp.eq.s32.totalorder %v6614_v56, %v6202_v50 }
 0x13c   : > { %4073 = vmatpush.msk.msrb.mxu3 %vm2436_vm10, %v4350_v21  ;;  %2780 = vmatmul.f32.vlgmr.msra.gmra.mxu2 %v2718_v2  ;;  %vm2428_vm10 = vcmp.eq.s32.totalorder %v4915_v0, %v6202_v50 }
 0x13d   : > { %4025 = vmatpush.msk.msrb.mxu0 %vm2340_vm11, %v4350_v21  ;;  %4041 = vmatpush.msk.msrb.mxu1 %vm2372_vm12, %v4350_v21  ;;  %vm2332_vm11 = vcmp.eq.s32.totalorder %v6577_v61, %v6202_v50  ;;  %vm2364_vm12 = vcmp.eq.s32.totalorder %v6578_v51, %v6202_v50  ;;  %v1632_v61 = vadd.f32 %v1631_v22, %v1612_v40 }
 0x13e   : > { %4059 = vmatpush.msk.msrb.mxu2 %vm2400_vm13, %v4350_v21  ;;  %4074 = vmatpush.msk.msrb.mxu3 %vm2434_vm14, %v4350_v21  ;;  %vm2426_vm13 = vcmp.eq.s32.totalorder %v4960_v52, %v6202_v50  ;;  %vm2330_vm14 = vcmp.eq.s32.totalorder %v4495_v1, %v6202_v50  ;;  %v1076_v1 = vpop.f32.mrf.mxu3  ;;  %v1738_v52 = vperm.slane %v3563_v39, 1 }
 0x13f   : > { %2800 = vmatmul.f32.vlgmr.msra.gmra.mxu3 %v2719_v5  ;;  %4026 = vmatpush.msk.msrb.mxu0 %vm2338_vm15, %v4350_v21  ;;  %vm2362_vm15 = vcmp.eq.s32.totalorder %v4977_v9, %v6202_v50  ;;  %v1037_v50 = vadd.f32 %v1036_v12, %v1016_v11  ;;  %v1162_v9 = vperm.slane %v1159_v42, 1 }
 0x140   : > { %4042 = vmatpush.msk.msrb.mxu1 %vm2370_vm0, %v4350_v21  ;;  %4060 = vmatpush.msk.msrb.mxu2 %vm2398_vm1, %v4350_v21  ;;  %v1671_v24 = vpop.f32.mrf.mxu0  ;;  %vm1170_vm0 = vcmask 1043456  }
 0x141   : > { %4075 = vmatpush.msk.msrb.mxu3 %vm2432_vm2, %v4350_v21  ;;  %2740 = vmatmul.f32.vlgmr.msra.gmra.mxu0 %v2716_v8  ;;  %v1691_v25 = vpop.f32.mrf.mxu1  ;;  %v1711_v26 = vpop.f32.mrf.mxu2  ;;  %v1057_v48 = vadd.f32 %v1056_v14, %v1037_v50  ;;  %v4079_v14 = vld [vmem:[%s4485_s25 + $0x3] ss:$4 sm:$0x3] }
 0x142   : > { %2760 = vmatmul.f32.vlgmr.msra.gmra.mxu1 %v2717_v10  ;;  %4027 = vmatpush.msk.msrb.mxu0 %vm2336_vm3, %v4350_v21  ;;  %v1692_v34 = vadd.f32 %v1691_v25, %v1671_v24  ;;  %v2887_v24 = vperm.slane %v4079_v14, 0 }
 0x143   : > { %4043 = vmatpush.msk.msrb.mxu1 %vm2368_vm4, %v4350_v21  ;;  %4061 = vmatpush.msk.msrb.mxu2 %vm2396_vm5, %v4350_v21 }
 0x144   : > { %4076 = vmatpush.msk.msrb.mxu3 %vm2430_vm6, %v4350_v21  ;;  %4028 = vmatpush.msk.msrb.mxu0 %vm2334_vm7, %v4350_v21  ;;  %v1712_v38 = vadd.f32 %v1711_v26, %v1692_v34 }
 0x145   : > { %4044 = vmatpush.msk.msrb.mxu1 %vm2366_vm8, %v4350_v21  ;;  %4062 = vmatpush.msk.msrb.mxu2 %vm2394_vm9, %v4350_v21 }
 0x146   : > { %4077 = vmatpush.msk.msrb.mxu3 %vm2428_vm10, %v4350_v21  ;;  %2860 = vmatmul.f32.vlgmr.msrb.gmra.mxu2 %v2718_v2  ;;  %v1156_v18 = vpop.f32.mrf.mxu3  ;;  %v1077_v2 = vadd.f32 %v1076_v1, %v1057_v48 }
 0x147   : > { %4029 = vmatpush.msk.msrb.mxu0 %vm2332_vm11, %v4350_v21  ;;  %4045 = vmatpush.msk.msrb.mxu1 %vm2364_vm12, %v4350_v21  ;;  %v1157_v0 = vadd.f32 %v1156_v18, %v1137_v43  ;;  %v2888_v18 = vperm.slane %v4079_v14, 1 }
 0x148   : > { %4078 = vmatpush.msk.msrb.mxu3 %vm2426_vm13, %v4350_v21  ;;  %v1165_v19 = vmul.f32 %v1161_v3, %v1077_v2 }
 0x149   : > { %2880 = vmatmul.f32.vlgmr.msrb.gmra.mxu3 %v2719_v5  ;;  %4030 = vmatpush.msk.msrb.mxu0 %vm2330_vm14, %v4350_v21  ;;  %v1166_v53 = vmul.f32 %v1162_v9, %v1157_v0 }
 0x14a   : > { %4046 = vmatpush.msk.msrb.mxu1 %vm2362_vm15, %v4350_v21  ;;  %2820 = vmatmul.f32.vlgmr.msrb.gmra.mxu0 %v2716_v8 }
 0x14b   : > { %2840 = vmatmul.f32.vlgmr.msrb.gmra.mxu1 %v2717_v10  ;;  %v1169_v15 = vrot.slane %v1166_v53, 4 }
 0x14d   : > { %v1171_v26 = vsel %vm1170_vm0, %v1165_v19, %v1169_v15 }
 0x14e   : > { %v1651_v23 = vpop.f32.mrf.mxu3 }
 0x14f   : > { %v1652_v63 = vadd.f32 %v1651_v23, %v1632_v61 }
 0x151   : > { %v1741_v12 = vmul.f32 %v1737_v13, %v1652_v63 }
 0x156   : > { %v1731_v27 = vpop.f32.mrf.mxu3 }
 0x157   : > { %v1732_v51 = vadd.f32 %v1731_v27, %v1712_v38 }
 0x159   : > { %v1742_v56 = vmul.f32 %v1738_v52, %v1732_v51 }
 0x15b   : > { %v1745_v4 = vrot.slane %v1742_v56, 4 }
 0x15d   : > { %v1746_v1 = vsel %vm1170_vm0, %v1741_v12, %v1745_v4 }
 0x17a   : > { %v2166_v21 = vpop.f32.mrf.mxu0 }
 0x17b   : > { %v2186_v28 = vpop.f32.mrf.mxu1  ;;  %v2206_v29 = vpop.f32.mrf.mxu2 }
 0x17c   : > { %v2187_v60 = vadd.f32 %v2186_v28, %v2166_v21  ;;  %v1748_v28 = vadd.f32 %v1746_v1, %v1171_v26 }
 0x17e   : > { %v2226_v30 = vpop.f32.mrf.mxu3  ;;  %v2207_v49 = vadd.f32 %v2206_v29, %v2187_v60 }
 0x180   : > { %v2227_v6 = vadd.f32 %v2226_v30, %v2207_v49 }
 0x182   : > { %v2316_v22 = vmul.f32 %v2312_v7, %v2227_v6 }
 0x184   : > { %v2246_v31 = vpop.f32.mrf.mxu0 }
 0x185   : > { %v2266_v32 = vpop.f32.mrf.mxu1  ;;  %v2286_v33 = vpop.f32.mrf.mxu2 }
 0x186   : > { %v2267_v37 = vadd.f32 %v2266_v32, %v2246_v31 }
 0x188   : > { %v2306_v35 = vpop.f32.mrf.mxu3  ;;  %v2287_v44 = vadd.f32 %v2286_v33, %v2267_v37 }
 0x18a   : > { %v2307_v46 = vadd.f32 %v2306_v35, %v2287_v44 }
 0x18c   : > { %v2317_v58 = vmul.f32 %v2313_v55, %v2307_v46 }
 0x18e   : > { %v2320_v16 = vrot.slane %v2317_v58, 4 }
 0x190   : > { %v2321_v27 = vsel %vm1170_vm0, %v2316_v22, %v2320_v16 }
 0x191   : > { %v2323_v31 = vadd.f32 %v2321_v27, %v1748_v28 }
 0x1be   : > { %v2741_v41 = vpop.f32.mrf.mxu0 }
 0x1bf   : > { %v2761_v45 = vpop.f32.mrf.mxu1  ;;  %v2781_v47 = vpop.f32.mrf.mxu2 }
 0x1c0   : > { %v2762_v59 = vadd.f32 %v2761_v45, %v2741_v41 }
 0x1c2   : > { %v2801_v62 = vpop.f32.mrf.mxu3  ;;  %v2782_v8 = vadd.f32 %v2781_v47, %v2762_v59 }
 0x1c4   : > { %v2802_v23 = vadd.f32 %v2801_v62, %v2782_v8 }
 0x1c6   : > { %v2891_v29 = vmul.f32 %v2887_v24, %v2802_v23 }
 0x1c7   : > { %v2821_v54 = vpop.f32.mrf.mxu0 }
 0x1c8   : > { %v2841_v5 = vpop.f32.mrf.mxu1 }
 0x1c9   : > { %v2842_v10 = vadd.f32 %v2841_v5, %v2821_v54  ;;  %v2861_v11 = vpop.f32.mrf.mxu2 }
 0x1cb   : > { %v2862_v17 = vadd.f32 %v2861_v11, %v2842_v10 }
 0x1cc   : > { %v2881_v20 = vpop.f32.mrf.mxu3 }
 0x1cd   : > { %v2882_v25 = vadd.f32 %v2881_v20, %v2862_v17 }
 0x1cf   : > { %v2892_v21 = vmul.f32 %v2888_v18, %v2882_v25 }
 0x1d1   : > { %v2895_v30 = vrot.slane %v2892_v21, 4 }
 0x1d3   : > { %v2896_v32 = vsel %vm1170_vm0, %v2891_v29, %v2895_v30 }
 0x1d4   : > { %v2898_v33 = vadd.f32 %v2896_v32, %v2323_v31 }
 0x1d6   : > { %2904 = vst [vmem:[%s262_s15] sm:$0xff] %v2898_v33 }
 0x1d7   : > { %4284 = shalt.err (!%p4281_p0)
}
 0x1d8   : > { %4096 = dma.vmem_to_hbm [thread:$0]  (%p4446_p5), %s2920_s11, 128, %s2922_s19, %s2906_s22  }
 0x1d9 PF: > { %s2933_s30 = sand.u32 1, %s4327_s12   ;;  %p4110_p3 = pnand %p3038_p9, %p4416_p6 }
 0x1da   : > { %s2934_s9 = scalar_lea.sflag [#allocation6], %s2933_s30 }
 0x1db   : > { %p4111_p7 = pneg %p4110_p3 }
 0x1dd   : > { %4322 = dma.done.wait (%p4111_p7), %s2934_s9, 128  }
 0x1de   : > { %4324 = vsyncadd (%p4111_p7), %s2934_s9, 4294967168  ;;  %s22_s17 = sadd.s32 1, %s4347_s17   ;;  %s6627_s28 = sld [smem:[#allocation17_spill]] }
 0x1df   : > { %p19_p10 = scmp.ge.s32.totalorder %s22_s17, 4   ;;  %s6628_s15 = sld [smem:[#allocation15_spill]] }
 0x1e0   : > { %s6629_s16 = sld [smem:[#allocation16_spill]]  ;;  %s6630_s12 = smov %s4331_s13 }
 0x1e1   : > { %s6631_s13 = smov %s4335_s14  ;;  %21 = sbr.rel (!%p19_p10) target bundleno = 10 (0xa), region = 113 }
 0x1e4   : > { %s6632_s14 = smov %s6627_s28 }
 0x1e6   :  { %2940 = vsyncpa [#allocation5], 1 }
 0x1e7   :  { %2942 = vsyncpa [#allocation5 + $0x1], 1 }
 0x1e8   :  { %2943 = vsyncpa [#allocation8], 1 }
 0x1e9   :  { %2945 = vsyncpa [#allocation8 + $0x1], 1 }
 0x1ea   :  { %2946 = vsyncpa [#allocation6], 1 }
 0x1eb   :  { %2948 = vsyncpa [#allocation6 + $0x1], 1 }

</bundles_post_ra>
